<compile_context>
chip_gen: v5e
topology: v5e:2x2
jax: 0.10.0
libtpu: 0.0.40
codegen_flags: <defaults>
</compile_context>

<pallas_src>
import jax
import jax.numpy as jnp
from jax.experimental import pallas as pl
from jax.experimental.pallas import tpu as pltpu

# ------------------------- problem sizes -------------------------
D = 32            # hidden_dim
Q = 10            # num_queries (torch forward hard-codes repeat(1, 10))
QPAD = 16         # queries padded to a multiple of 8 rows (tile-aligned row blocks)
BS = 2            # batch size
TEMP = 5.0        # temperature


# ------------------------- Pallas kernel -------------------------
def pe_kernel(scal_ref, cs_ref, w_ref, out_ref):
    # scal_ref: SMEM (bs*4,) f32, layout [x1_0,y1_0,x2_0,y2_0, x1_1,y1_1,x2_1,y2_1, ...]
    # cs_ref:   VMEM (8 + R + 2D, D) f32:
    #             row 0 = invT (1/T**(2i/D)), row 1 = phase (0 / pi/2), row 2 = b3,
    #             rows 8:8+R      = raw x_embed weight, replicated over lanes, per flat row
    #             rows 8+R:8+R+2D = w3 (2D, D)
    # w_ref:    VMEM (2*2D + 2, 2D) f32:
    #             rows 0:D   = w1_x, rows D:2D = w1_y, rows 2D:4D = w2,
    #             row 4D = b1, row 4D+1 = b2
    # out_ref:  VMEM (R, D) f32, flat row = batch*QPAD + query
    r, d = out_ref.shape
    d2 = 2 * d
    bs = scal_ref.shape[0] // 4
    qpad = r // bs

    # ---- constants / parameters (all row slices start on multiples of 8) ----
    invT = cs_ref[0:1, :]                                # (1, D)
    phase = cs_ref[1:2, :]                               # (1, D)
    b3 = cs_ref[2:3, :]                                  # (1, D)
    xemb = jax.nn.sigmoid(cs_ref[8:8 + r, :])            # (R, D) replicated across lanes
    w3 = cs_ref[8 + r:8 + r + d2, :]                     # (2D, D)

    w1x = w_ref[0:d, :]                                  # (D, 2D)
    w1y = w_ref[d:d2, :]                                 # (D, 2D)
    w2 = w_ref[d2:2 * d2, :]                             # (2D, 2D)
    b1 = w_ref[2 * d2:2 * d2 + 1, :]                     # (1, 2D)
    b2 = w_ref[2 * d2 + 1:2 * d2 + 2, :]                 # (1, 2D)

    # ---- per-row line parameters: SMEM scalars splat into iota-masked selects ----
    row = jax.lax.broadcasted_iota(jnp.int32, (r, d), 0)

    def sel(j):
        # per-row value of the j-th runtime scalar (0:x1, 1:y1, 2:x2, 3:y2)
        v = jnp.full((r, d), scal_ref[4 * (bs - 1) + j], dtype=jnp.float32)
        for bi in range(bs - 2, -1, -1):                 # tiny static unroll (bs-1 selects)
            v = jnp.where(row < (bi + 1) * qpad, scal_ref[4 * bi + j], v)
        return v

    x1r, y1r, x2r, y2r = sel(0), sel(1), sel(2), sel(3)
    k_rows = (y2r - y1r) / (x2r - x1r)                   # unguarded, mirrors torch
    b_rows = y1r - k_rows * x1r

    # ---- positional encodings: single sin with per-lane phase (cos = sin(.+pi/2)) ----
    pe_x = jnp.sin(xemb * invT + phase)                  # (R, D)
    pe_y = jnp.sin((k_rows * xemb + b_rows) * invT + phase)

    # ---- 3-layer MLP as flat 2-D matmuls; w1 split replaces the feature concat ----
    h = (jnp.dot(pe_x, w1x, preferred_element_type=jnp.float32)
         + jnp.dot(pe_y, w1y, preferred_element_type=jnp.float32) + b1)
    h = jnp.maximum(h, 0.0)
    h = jnp.maximum(jnp.dot(h, w2, preferred_element_type=jnp.float32) + b2, 0.0)
    o = jnp.dot(h, w3, preferred_element_type=jnp.float32) + b3     # (R, D)
    out_ref[...] = o.astype(out_ref.dtype)


def constrained_learnable_pe(x1, y1, x2, y2, packed):
    """x1,y1,x2,y2: (bs,) float32.  Returns (bs, Q, D) float32."""
    bs = x1.shape[0]
    scal = jnp.stack([x1, y1, x2, y2], axis=1).reshape(bs * 4)   # (bs*4,) -> SMEM
    smem = pl.BlockSpec(memory_space=pltpu.MemorySpace.SMEM)
    vmem = pl.BlockSpec(memory_space=pltpu.MemorySpace.VMEM)
    out = pl.pallas_call(
        pe_kernel,
        out_shape=jax.ShapeDtypeStruct((bs * QPAD, D), jnp.float32),
        in_specs=[smem, vmem, vmem],
        out_specs=vmem,
    )(scal, packed['cslab'], packed['wslab'])
    # layout plumbing outside the kernel: drop the padded query rows
    return out.reshape(bs, QPAD, D)[:, :Q, :]


# ------------------------- pure-JAX reference -------------------------
def reference(x1, y1, x2, y2, p):
    invT = p['invT']                                          # (D,)
    even = (jnp.arange(D) % 2 == 0)
    xemb = jax.nn.sigmoid(p['x_embed_w'][:, 0])               # (Q,)
    ang_x = xemb[:, None] * invT[None, :]
    pe_x = jnp.where(even[None, :], jnp.sin(ang_x), jnp.cos(ang_x))
    k = (y2 - y1) / (x2 - x1)
    b = y1 - k * x1
    y = k[:, None] * xemb[None, :] + b[:, None]               # (bs, Q)
    ang_y = y[:, :, None] * invT[None, None, :]
    pe_y = jnp.where(even[None, None, :], jnp.sin(ang_y), jnp.cos(ang_y))
    bs = x1.shape[0]
    feat = jnp.concatenate([jnp.broadcast_to(pe_x[None], (bs, Q, D)), pe_y], -1)
    h = jax.nn.relu(feat @ p['w1'] + p['b1'])
    h = jax.nn.relu(h @ p['w2'] + p['b2'])
    return h @ p['w3'] + p['b3']


# ------------------------- deterministic params -------------------------
def make_params(key):
    ks = jax.random.split(key, 7)
    d2 = 2 * D
    scale = 1.0 / jnp.sqrt(d2)
    i = jnp.arange(D, dtype=jnp.float32)
    # torch-parity frequency schedule: per-index i exponent 2i/D (exactly as the module)
    invT = 1.0 / (TEMP ** (2.0 * i / D))
    return {
        'x_embed_w': jax.random.normal(ks[0], (Q, 1), jnp.float32),
        'w1': jax.random.normal(ks[1], (d2, d2), jnp.float32) * scale,
        'b1': jax.random.normal(ks[2], (d2,), jnp.float32) * 0.1,
        'w2': jax.random.normal(ks[3], (d2, d2), jnp.float32) * scale,
        'b2': jax.random.normal(ks[4], (d2,), jnp.float32) * 0.1,
        'w3': jax.random.normal(ks[5], (d2, D), jnp.float32) * scale,
        'b3': jax.random.normal(ks[6], (D,), jnp.float32) * 0.1,
        'invT': invT,
    }


def pack_params(p, bs):
    """Pack parameters into 2 dense kernel slabs (done once, off the hot path)."""
    d2 = 2 * D
    r = bs * QPAD
    phase = jnp.where(jnp.arange(D) % 2 == 0, 0.0, jnp.pi / 2).astype(jnp.float32)

    # cslab (8 + R + 2D, D): header rows, replicated x_embed rows, w3 — every multi-row
    # block starts on a multiple-of-8 row so kernel slices are tile-aligned.
    cs = jnp.zeros((8 + r + d2, D), jnp.float32)
    cs = cs.at[0].set(p['invT'])
    cs = cs.at[1].set(phase)
    cs = cs.at[2].set(p['b3'])
    emb = jnp.zeros((QPAD,), jnp.float32).at[:Q].set(p['x_embed_w'][:, 0])      # (QPAD,)
    emb_rows = jnp.broadcast_to(jnp.tile(emb, (bs,))[:, None], (r, D))          # (R, D)
    cs = cs.at[8:8 + r].set(emb_rows)
    cs = cs.at[8 + r:8 + r + d2].set(p['w3'])

    # wslab (2*2D + 2, 2D): w1 (split halves contiguous), w2, then b1/b2 rows.
    w = jnp.zeros((2 * d2 + 2, d2), jnp.float32)
    w = w.at[0:d2].set(p['w1'])           # rows 0:D = w1_x, rows D:2D = w1_y
    w = w.at[d2:2 * d2].set(p['w2'])
    w = w.at[2 * d2].set(p['b1'])
    w = w.at[2 * d2 + 1].set(p['b2'])
    return {'cslab': cs, 'wslab': w}


if __name__ == "__main__":
    root = jax.random.PRNGKey(0)
    kp, kx1, ky1, kdx, ky2 = jax.random.split(root, 5)
    params = make_params(kp)
    packed = pack_params(params, BS)

    x1 = jax.random.normal(kx1, (BS,), jnp.float32)
    y1 = jax.random.normal(ky1, (BS,), jnp.float32)
    # ensure x2 != x1 (finite slope) — torch module has the same unguarded divide
    x2 = x1 + 1.0 + jnp.abs(jax.random.normal(kdx, (BS,), jnp.float32))
    y2 = jax.random.normal(ky2, (BS,), jnp.float32)

    out = constrained_learnable_pe(x1, y1, x2, y2, packed)
    out = jax.block_until_ready(out)

    ref = reference(x1, y1, x2, y2, params)
    assert out.shape == (BS, Q, D), out.shape
    assert jnp.allclose(out, ref, rtol=1e-4, atol=1e-4), \
        float(jnp.max(jnp.abs(out - ref)))

    print("KERNEL_OK")
</pallas_src>

<mosaic_0001>
module attributes {stable_mosaic.version = 11 : i64} {
  func.func @pe_kernel(%arg0: memref<8xf32, #tpu.memory_space<smem>>, %arg1: memref<104x32xf32, #tpu.memory_space<vmem>>, %arg2: memref<130x64xf32, #tpu.memory_space<vmem>>, %arg3: memref<32x32xf32, #tpu.memory_space<vmem>>) attributes {dimension_semantics = [], scalar_prefetch = 0 : i64, scratch_operands = 0 : i64, tpu.core_type = #tpu.core_type<tc>} {
    %c0 = arith.constant 0 : index
    %c0_0 = arith.constant 0 : index
    %0 = vector.load %arg1[%c0, %c0_0] : memref<104x32xf32, #tpu.memory_space<vmem>>, vector<1x32xf32>
    %c1 = arith.constant 1 : index
    %c0_1 = arith.constant 0 : index
    %1 = vector.load %arg1[%c1, %c0_1] : memref<104x32xf32, #tpu.memory_space<vmem>>, vector<1x32xf32>
    %c2 = arith.constant 2 : index
    %c0_2 = arith.constant 0 : index
    %2 = vector.load %arg1[%c2, %c0_2] : memref<104x32xf32, #tpu.memory_space<vmem>>, vector<1x32xf32>
    %c8 = arith.constant 8 : index
    %c0_3 = arith.constant 0 : index
    %3 = vector.load %arg1[%c8, %c0_3] : memref<104x32xf32, #tpu.memory_space<vmem>>, vector<32x32xf32>
    %4 = arith.negf %3 : vector<32x32xf32>
    %5 = math.exp %4 : vector<32x32xf32>
    %cst = arith.constant 1.000000e+00 : f32
    %6 = vector.broadcast %cst : f32 to vector<32x32xf32>
    %7 = arith.addf %6, %5 : vector<32x32xf32>
    %8 = arith.divf %6, %7 : vector<32x32xf32>
    %c40 = arith.constant 40 : index
    %c0_4 = arith.constant 0 : index
    %9 = vector.load %arg1[%c40, %c0_4] : memref<104x32xf32, #tpu.memory_space<vmem>>, vector<64x32xf32>
    %c0_5 = arith.constant 0 : index
    %c0_6 = arith.constant 0 : index
    %10 = vector.load %arg2[%c0_5, %c0_6] : memref<130x64xf32, #tpu.memory_space<vmem>>, vector<32x64xf32>
    %c32 = arith.constant 32 : index
    %c0_7 = arith.constant 0 : index
    %11 = vector.load %arg2[%c32, %c0_7] : memref<130x64xf32, #tpu.memory_space<vmem>>, vector<32x64xf32>
    %c64 = arith.constant 64 : index
    %c0_8 = arith.constant 0 : index
    %12 = vector.load %arg2[%c64, %c0_8] : memref<130x64xf32, #tpu.memory_space<vmem>>, vector<64x64xf32>
    %c128 = arith.constant 128 : index
    %c0_9 = arith.constant 0 : index
    %13 = vector.load %arg2[%c128, %c0_9] : memref<130x64xf32, #tpu.memory_space<vmem>>, vector<1x64xf32>
    %c129 = arith.constant 129 : index
    %c0_10 = arith.constant 0 : index
    %14 = vector.load %arg2[%c129, %c0_10] : memref<130x64xf32, #tpu.memory_space<vmem>>, vector<1x64xf32>
    %15 = tpu.iota {dimensions = array<i32: 0>} : vector<32x32xi32>
    %c4 = arith.constant 4 : index
    %16 = memref.load %arg0[%c4] : memref<8xf32, #tpu.memory_space<smem>>
    %17 = vector.broadcast %16 : f32 to vector<32x32xf32>
    %c16_i32 = arith.constant 16 : i32
    %18 = vector.broadcast %c16_i32 : i32 to vector<32x32xi32>
    %19 = arith.cmpi slt, %15, %18 : vector<32x32xi32>
    %c0_11 = arith.constant 0 : index
    %20 = memref.load %arg0[%c0_11] : memref<8xf32, #tpu.memory_space<smem>>
    %21 = vector.broadcast %20 : f32 to vector<32x32xf32>
    %22 = arith.select %19, %21, %17 : vector<32x32xi1>, vector<32x32xf32>
    %c5 = arith.constant 5 : index
    %23 = memref.load %arg0[%c5] : memref<8xf32, #tpu.memory_space<smem>>
    %24 = vector.broadcast %23 : f32 to vector<32x32xf32>
    %c16_i32_12 = arith.constant 16 : i32
    %25 = vector.broadcast %c16_i32_12 : i32 to vector<32x32xi32>
    %26 = arith.cmpi slt, %15, %25 : vector<32x32xi32>
    %c1_13 = arith.constant 1 : index
    %27 = memref.load %arg0[%c1_13] : memref<8xf32, #tpu.memory_space<smem>>
    %28 = vector.broadcast %27 : f32 to vector<32x32xf32>
    %29 = arith.select %26, %28, %24 : vector<32x32xi1>, vector<32x32xf32>
    %c6 = arith.constant 6 : index
    %30 = memref.load %arg0[%c6] : memref<8xf32, #tpu.memory_space<smem>>
    %31 = vector.broadcast %30 : f32 to vector<32x32xf32>
    %c16_i32_14 = arith.constant 16 : i32
    %32 = vector.broadcast %c16_i32_14 : i32 to vector<32x32xi32>
    %33 = arith.cmpi slt, %15, %32 : vector<32x32xi32>
    %c2_15 = arith.constant 2 : index
    %34 = memref.load %arg0[%c2_15] : memref<8xf32, #tpu.memory_space<smem>>
    %35 = vector.broadcast %34 : f32 to vector<32x32xf32>
    %36 = arith.select %33, %35, %31 : vector<32x32xi1>, vector<32x32xf32>
    %c7 = arith.constant 7 : index
    %37 = memref.load %arg0[%c7] : memref<8xf32, #tpu.memory_space<smem>>
    %38 = vector.broadcast %37 : f32 to vector<32x32xf32>
    %c16_i32_16 = arith.constant 16 : i32
    %39 = vector.broadcast %c16_i32_16 : i32 to vector<32x32xi32>
    %40 = arith.cmpi slt, %15, %39 : vector<32x32xi32>
    %c3 = arith.constant 3 : index
    %41 = memref.load %arg0[%c3] : memref<8xf32, #tpu.memory_space<smem>>
    %42 = vector.broadcast %41 : f32 to vector<32x32xf32>
    %43 = arith.select %40, %42, %38 : vector<32x32xi1>, vector<32x32xf32>
    %44 = arith.subf %43, %29 : vector<32x32xf32>
    %45 = arith.subf %36, %22 : vector<32x32xf32>
    %46 = arith.divf %44, %45 : vector<32x32xf32>
    %47 = arith.mulf %46, %22 : vector<32x32xf32>
    %48 = arith.subf %29, %47 : vector<32x32xf32>
    %49 = vector.broadcast %0 : vector<1x32xf32> to vector<32x32xf32>
    %50 = arith.mulf %8, %49 : vector<32x32xf32>
    %51 = vector.broadcast %1 : vector<1x32xf32> to vector<32x32xf32>
    %52 = arith.addf %50, %51 : vector<32x32xf32>
    %53 = math.sin %52 : vector<32x32xf32>
    %54 = arith.mulf %46, %8 : vector<32x32xf32>
    %55 = arith.addf %54, %48 : vector<32x32xf32>
    %56 = vector.broadcast %0 : vector<1x32xf32> to vector<32x32xf32>
    %57 = arith.mulf %55, %56 : vector<32x32xf32>
    %58 = vector.broadcast %1 : vector<1x32xf32> to vector<32x32xf32>
    %59 = arith.addf %57, %58 : vector<32x32xf32>
    %60 = math.sin %59 : vector<32x32xf32>
    %cst_17 = arith.constant dense<0.000000e+00> : vector<32x64xf32>
    %61 = tpu.matmul %53, %10, %cst_17 {dimension_numbers = #tpu.dot_dimension_numbers<[1], [0], [0], [1], [0, 0, 1, 1], [], []>} : vector<32x32xf32>, vector<32x64xf32>, vector<32x64xf32> -> vector<32x64xf32>
    %cst_18 = arith.constant dense<0.000000e+00> : vector<32x64xf32>
    %62 = tpu.matmul %60, %11, %cst_18 {dimension_numbers = #tpu.dot_dimension_numbers<[1], [0], [0], [1], [0, 0, 1, 1], [], []>} : vector<32x32xf32>, vector<32x64xf32>, vector<32x64xf32> -> vector<32x64xf32>
    %63 = arith.addf %61, %62 : vector<32x64xf32>
    %64 = vector.broadcast %13 : vector<1x64xf32> to vector<32x64xf32>
    %65 = arith.addf %63, %64 : vector<32x64xf32>
    %cst_19 = arith.constant 0.000000e+00 : f32
    %66 = vector.broadcast %cst_19 : f32 to vector<32x64xf32>
    %67 = arith.maximumf %65, %66 : vector<32x64xf32>
    %cst_20 = arith.constant dense<0.000000e+00> : vector<32x64xf32>
    %68 = tpu.matmul %67, %12, %cst_20 {dimension_numbers = #tpu.dot_dimension_numbers<[1], [0], [0], [1], [0, 0, 1, 1], [], []>} : vector<32x64xf32>, vector<64x64xf32>, vector<32x64xf32> -> vector<32x64xf32>
    %69 = vector.broadcast %14 : vector<1x64xf32> to vector<32x64xf32>
    %70 = arith.addf %68, %69 : vector<32x64xf32>
    %cst_21 = arith.constant 0.000000e+00 : f32
    %71 = vector.broadcast %cst_21 : f32 to vector<32x64xf32>
    %72 = arith.maximumf %70, %71 : vector<32x64xf32>
    %cst_22 = arith.constant dense<0.000000e+00> : vector<32x32xf32>
    %73 = tpu.matmul %72, %9, %cst_22 {dimension_numbers = #tpu.dot_dimension_numbers<[1], [0], [0], [1], [0, 0, 1, 1], [], []>} : vector<32x64xf32>, vector<64x32xf32>, vector<32x32xf32> -> vector<32x32xf32>
    %74 = vector.broadcast %2 : vector<1x32xf32> to vector<32x32xf32>
    %75 = arith.addf %73, %74 : vector<32x32xf32>
    %c0_23 = arith.constant 0 : index
    %c0_24 = arith.constant 0 : index
    %76 = vector.load %arg3[%c0_23, %c0_24] : memref<32x32xf32, #tpu.memory_space<vmem>>, vector<32x32xf32>
    tpu.vector_store %arg3[%c0_23, %c0_24], %75 {strides = array<i32>} : memref<32x32xf32, #tpu.memory_space<vmem>>, vector<32x32xf32>,
    return
  }
}

</mosaic_0001>

<bundles_post_ra>
// kernel: tpu_custom_call.1
= control target key start
LH: loop header
LB: loop body
LE: loop exit
PB: predicated region body
PF: predicated region fallthrough
CT: control target
= control target key end

     0   :  { %8 = vsyncpa [#allocation4], 0  ;;  %s3019_s0 = inlined_call_operand.vmem [shape: f32[8], index: 0, kind: input, shape index: {}]   ;;  %s3020_s1 = inlined_call_operand.vmem [shape: f32[104,32], index: 1, kind: input, shape index: {}]   ;;  %s3021_s2 = inlined_call_operand.vmem [shape: f32[130,64], index: 2, kind: input, shape index: {}]   ;;  %s3022_s3 = inlined_call_operand.hbm [shape: f32[32,32], index: 3, kind: output, shape index: {}]  }
   0x1   :  { %9 = vsyncpa [#allocation3], 0  ;;  %s15_s14 = sshll.u32 %s3019_s0, 4  ;;  %s1853_s15 = smov [#allocation2]   ;;  %s16_s14 = int_to_ptr.vmem [resolvable:$true] %s15_s14 }
   0x2   :  { %18 = dma.vmem_to_smem %s16_s14, 16, %s1853_s15, [#allocation4]  }
   0x3   :  { %1849 = dma.done.wait [#allocation4], 16  }
   0x4   :  { %1850 = vsyncadd [#allocation4], 4294967280 }
   0x5   :  { %27 = sfence }
   0x6   :  { %v126_v0 = vld [vmem:[%s3021_s2 + $0x38] sm:$0xff]  ;;  %v125_v2 = vld [vmem:[%s3021_s2 + $0x30] sm:$0xff]  ;;  %s1896_s22 = sld [smem:[#allocation2]]  ;;  %v124_v4 = vld [vmem:[%s3021_s2 + $0x28] sm:$0xff]  ;;  %s1861_s9 = smov [#allocation5]  }
   0x7   :  { %v122_v1 = vld [vmem:[%s3021_s2 + $0x18] sm:$0xff]  ;;  %1545 = vmatpush.msra.mxu0 %v126_v0  ;;  %v121_v3 = vld [vmem:[%s3021_s2 + $0x10] sm:$0xff]  ;;  %v120_v5 = vld [vmem:[%s3021_s2 + $0x8] sm:$0xff]  ;;  %s1732_s28 = sld [smem:[#allocation2 + $0x2]]  ;;  %s1711_s12 = sshll.u32 %s3022_s3, 4  ;;  %s1712_s12 = int_to_ptr.hbm [resolvable:$true] %s1711_s12 }
   0x8   :  { %1586 = vmatpush.msra.mxu1 %v122_v1  ;;  %v31_v6 = vld [vmem:[%s3020_s1 + $0x8] sm:$0xff]  ;;  %v123_v7 = vld [vmem:[%s3021_s2 + $0x20] sm:$0xff]  ;;  %v32_v10 = vld [vmem:[%s3020_s1 + $0x10] sm:$0xff]  ;;  %s1920_s10 = sld [smem:[#allocation2 + $0x1]]  ;;  %s1862_s13 = smov 128  }
   0x9   :  { %1546 = vmatpush.msra.mxu0 %v125_v2  ;;  %v119_v8 = vld [vmem:[%s3021_s2] sm:$0xff]  ;;  %v1724_v9 = vmul.f32 -1.442695, %v31_v6  ;;  %v1725_v12 = vmul.f32 -1.442695, %v32_v10  ;;  %s1734_s11 = sld [smem:[#allocation2 + $0x3]] }
   0xa   :  { %1587 = vmatpush.msra.mxu1 %v121_v3  ;;  %v1937_v48 = vld [vmem:[%s3020_s1] ss:$0 sm:$0xff]  ;;  %v1944_v52 = vld [vmem:[%s3020_s1 + $0x1] ss:$0 sm:$0xff]  ;;  %s2257_s16 = sld [smem:[#allocation2 + $0x4]]  ;;  %s1863_s14 = smov 8  }
   0xb   :  { %1547 = vmatpush.msra.mxu0 %v124_v4  ;;  %1791 = vpow2.f32 %v1724_v9  ;;  %s2270_s17 = sld [smem:[#allocation2 + $0x6]] }
   0xc   :  { %1588 = vmatpush.msra.mxu1 %v120_v5  ;;  %v149_v11 = vstv %s1896_s22  ;;  %1793 = vpow2.f32 %v1725_v12  ;;  %s2362_s20 = sld [smem:[#allocation2 + $0x5]] }
   0xd   :  { %1548 = vmatpush.msra.mxu0 %v123_v7  ;;  %v165_v13 = vstv %s1732_s28  ;;  %s2366_s21 = sld [smem:[#allocation2 + $0x7]] }
   0xe   :  { %1589 = vmatpush.msra.mxu1 %v119_v8  ;;  %v182_v14 = vsub.f32 %v165_v13, %v149_v11  ;;  %v157_v21 = vstv %s1920_s10  ;;  %s1709_s10 = sshll.u32 %s1861_s9, 4  ;;  %s1710_s10 = int_to_ptr.vmem [resolvable:$true] %s1709_s10 }
   0xf   :  { %v173_v24 = vstv %s1734_s11 }
  0x10   :  { %1795 = vrcp.f32 %v182_v14  ;;  %v195_v22 = vand.u32 2147483647, %v182_v14  ;;  %v197_v23 = vand.u32 2147483648, %v182_v14  ;;  %vm191_vm0 = vweird.f32 %v182_v14 }
  0x11   :  { %v1792_v15 = vpop.eup %1791  ;;  %v178_v30 = vsub.f32 %v173_v24, %v157_v21 }
  0x12   :  { %v47_v16 = vadd.f32 1.0, %v1792_v15  ;;  %v1794_v17 = vpop.eup %1793  ;;  %vm196_vm4 = vcmp.eq.f32.partialorder %v195_v22, 8.507059e+37  ;;  %v198_v32 = vor.u32 1.1754944e-38, %v197_v23 }
  0x13   :  { %v48_v18 = vadd.f32 1.0, %v1794_v17 }
  0x14   :  { %1797 = vrcp.f32 %v47_v16  ;;  %v62_v27 = vand.u32 2147483648, %v47_v16  ;;  %vm56_vm2 = vweird.f32 %v47_v16  ;;  %v60_v35 = vand.u32 2147483647, %v47_v16 }
  0x15   :  { %1799 = vrcp.f32 %v48_v18  ;;  %vm71_vm6 = vweird.f32 %v48_v18  ;;  %v77_v41 = vand.u32 2147483648, %v48_v18  ;;  %v75_v45 = vand.u32 2147483647, %v48_v18 }
  0x16   :  { %v1796_v19 = vpop.eup %1795  ;;  %v63_v37 = vor.u32 1.1754944e-38, %v62_v27  ;;  %vm61_vm9 = vcmp.eq.f32.partialorder %v60_v35, 8.507059e+37 }
  0x17   :  { %v187_v20 = vmul.f32 %v1796_v19, %v182_v14  ;;  %vm192_vm1 = vweird.f32 %v1796_v19  ;;  %v78_v53 = vor.u32 1.1754944e-38, %v77_v41  ;;  %vm76_vm11 = vcmp.eq.f32.partialorder %v75_v45, 8.507059e+37 }
  0x18   :  { %vm1923_vm3 = vmor %vm191_vm0, %vm192_vm1  ;;  %v1856_v41 = vmov 2131351028   ;;  %v1858_v45 = vmov 920167782  }
  0x19   :  { %v188_v25 = vsub.f32 1.0, %v187_v20 }
  0x1a   :  { %v1798_v26 = vpop.eup %1797 }
  0x1b   :  { %v52_v28 = vmul.f32 %v1798_v26, %v47_v16  ;;  %v189_v29 = vmul.f32 %v1796_v19, %v188_v25  ;;  %v1800_v33 = vpop.eup %1799  ;;  %vm57_vm5 = vweird.f32 %v1798_v26 }
  0x1c   :  { %v67_v38 = vmul.f32 %v1800_v33, %v48_v18  ;;  %vm1930_vm7 = vmor %vm56_vm2, %vm57_vm5  ;;  %vm72_vm8 = vweird.f32 %v1800_v33 }
  0x1d   :  { %v53_v34 = vsub.f32 1.0, %v52_v28  ;;  %v190_v36 = vadd.f32 %v1796_v19, %v189_v29  ;;  %vm73_vm10 = vmor %vm71_vm6, %vm72_vm8 }
  0x1e   :  { %v68_v44 = vsub.f32 1.0, %v67_v38 }
  0x1f   :  { %v54_v39 = vmul.f32 %v1798_v26, %v53_v34  ;;  %v194_v40 = vsel %vm1923_vm3, %v1796_v19, %v190_v36  ;;  %v1854_v34 = vmov 683565275   ;;  %v1855_v36 = vmov 2475754826  }
  0x20   :  { %v199_v43 = vsel %vm196_vm4, %v198_v32, %v194_v40  ;;  %v69_v49 = vmul.f32 %v1800_v33, %v68_v44 }
  0x21   :  { %v55_v46 = vadd.f32 %v1798_v26, %v54_v39  ;;  %v200_v47 = vmul.f32 %v199_v43, %v178_v30  ;;  %v1857_v43 = vmov 2102212464  }
  0x22   :  { %v70_v55 = vadd.f32 %v1800_v33, %v69_v49 }
  0x23   :  { %v59_v50 = vsel %vm1930_vm7, %v1798_v26, %v55_v46  ;;  %v246_v51 = vmul.f32 %v200_v47, %v149_v11 }
  0x24   :  { %v64_v54 = vsel %vm61_vm9, %v63_v37, %v59_v50  ;;  %v74_v59 = vsel %vm73_vm10, %v1800_v33, %v70_v55 }
  0x25   :  { %v250_v56 = vsub.f32 %v157_v21, %v246_v51  ;;  %v884_v57 = vmul.f32 %v200_v47, %v64_v54  ;;  %v255_v58 = vmul.f32 %v1937_v48, %v64_v54  ;;  %v1951_v62 = vsel %vm76_vm11, %v78_v53, %v74_v59 }
  0x26   :  { %v885_v63 = vmul.f32 %v200_v47, %v1951_v62 }
  0x27   :  { %v888_v60 = vadd.f32 %v884_v57, %v250_v56  ;;  %v1949_v61 = vadd.f32 %v1944_v52, %v255_v58 }
  0x28   :  { %v889_v3 = vadd.f32 %v885_v63, %v250_v56  ;;  %v1859_v56 = vmov 1326507024  }
  0x29   :  { %v892_v0 = vmul.f32 %v1937_v48, %v888_v60  ;;  %v264_v1 = vand.u32 2147483647, %v1949_v61  ;;  %v267_v2 = vand.u32 2139095040, %v1949_v61 }
  0x2a   :  { %v893_v7 = vmul.f32 %v1937_v48, %v889_v3 }
  0x2b   :  { %v1958_v4 = vadd.f32 %v1944_v52, %v892_v0  ;;  %v268_v5 = vshrl.u32 %v267_v2, 23  ;;  %v271_v6 = vand.u32 8388607, %v264_v1 }
  0x2c   :  { %v1966_v12 = vadd.f32 %v1944_v52, %v893_v7 }
  0x2d   :  { %v900_v8 = vand.u32 2147483647, %v1958_v4  ;;  %v903_v9 = vand.u32 2139095040, %v1958_v4  ;;  %v1735_v10 = vadd.s32 4294967169, %v268_v5  ;;  %v272_v11 = vor.u32 8388608, %v271_v6 }
  0x2e   :  { %v1058_v20 = vand.u32 2139095040, %v1966_v12 }
  0x2f   :  { %v904_v13 = vshrl.u32 %v903_v9, 23  ;;  %v907_v14 = vand.u32 8388607, %v900_v8  ;;  %v274_v15 = vadd.s32 1, %v1735_v10  ;;  %v1970_v19 = vshll.u32 %v272_v11, 8 }
  0x30   :  { %v1980_v27 = vshrl.u32 %v1058_v20, 23 }
  0x31   :  { %v1747_v16 = vadd.s32 4294967169, %v904_v13  ;;  %v908_v17 = vor.u32 8388608, %v907_v14  ;;  %vm275_vm12 = vcmp.gt.s32.totalorder %v274_v15, 0  ;;  %v1978_v26 = vand.u32 65535, %v1970_v19 }
  0x32   :  { %v276_v18 = vsel %vm275_vm12, %v274_v15, 0  ;;  %v1986_v31 = vshrl.u32 %v1970_v19, 16 }
  0x33   :  { %v910_v21 = vadd.s32 1, %v1747_v16  ;;  %v1973_v22 = vshll.u32 %v908_v17, 8  ;;  %v278_v23 = vand.u32 31, %v276_v18  ;;  %v1975_v25 = vshrl.u32 %v276_v18, 5 }
  0x35   :  { %vm911_vm13 = vcmp.gt.s32.totalorder %v910_v21, 0  ;;  %v1983_v29 = vand.u32 65535, %v1973_v22  ;;  %v279_v30 = vsub.s32 32, %v278_v23  ;;  %v1991_v33 = vshrl.u32 %v1973_v22, 16 }
  0x36   :  { %v912_v24 = vsel %vm911_vm13, %v910_v21, 0  ;;  %v281_v35 = vshll.u32 %v1854_v34, %v278_v23  ;;  %v284_v37 = vshll.u32 %v1855_v36, %v278_v23  ;;  %v287_v49 = vshll.u32 %v1856_v41, %v278_v23 }
  0x37   :  { %v914_v28 = vand.u32 31, %v912_v24  ;;  %v1988_v32 = vshrl.u32 %v912_v24, 5  ;;  %v2001_v47 = vshrl.u32 %v1854_v34, %v279_v30  ;;  %v282_v54 = vshrl.u32 %v1855_v36, %v279_v30 }
  0x38   :  { %v285_v58 = vshrl.u32 %v1856_v41, %v279_v30  ;;  %v288_v3 = vshrl.u32 %v1857_v43, %v279_v30  ;;  %v290_v7 = vshll.u32 %v1857_v43, %v278_v23  ;;  %v291_v13 = vshrl.u32 %v1858_v45, %v279_v30 }
  0x39   :  { %v915_v38 = vsub.s32 32, %v914_v28  ;;  %v917_v39 = vshll.u32 %v1854_v34, %v914_v28  ;;  %v920_v40 = vshll.u32 %v1855_v36, %v914_v28  ;;  %v923_v42 = vshll.u32 %v1856_v41, %v914_v28 }
  0x3a   :  { %v926_v44 = vshll.u32 %v1857_v43, %v914_v28  ;;  %v929_v46 = vshll.u32 %v1858_v45, %v914_v28  ;;  %vm932_vm14 = vcmp.lt.s32.totalorder %v1988_v32, 1  ;;  %vm935_vm15 = vcmp.lt.s32.totalorder %v1988_v32, 4 }
  0x3b   :  { %v918_v50 = vshrl.u32 %v1855_v36, %v915_v38  ;;  %v921_v51 = vshrl.u32 %v1856_v41, %v915_v38  ;;  %v924_v53 = vshrl.u32 %v1857_v43, %v915_v38  ;;  %v927_v55 = vshrl.u32 %v1858_v45, %v915_v38 }
  0x3c   :  { %v930_v57 = vshrl.u32 %v1859_v56, %v915_v38  ;;  %vm934_vm0 = vcmp.lt.s32.totalorder %v1988_v32, 3  ;;  %vm933_vm1 = vcmp.lt.s32.totalorder %v1988_v32, 2  ;;  %v916_v9 = vshrl.u32 %v1854_v34, %v915_v38 }
  0x3d   :  { %v919_v59 = vor.u32 %v918_v50, %v917_v39  ;;  %v922_v60 = vor.u32 %v921_v51, %v920_v40  ;;  %v925_v63 = vor.u32 %v924_v53, %v923_v42  ;;  %v928_v0 = vor.u32 %v927_v55, %v926_v44 }
  0x3e   :  { %v931_v2 = vor.u32 %v930_v57, %v929_v46  ;;  %v2027_v17 = vor.u32 %v282_v54, %v281_v35  ;;  %v293_v21 = vshll.u32 %v1858_v45, %v278_v23  ;;  %v294_v24 = vshrl.u32 %v1859_v56, %v279_v30 }
  0x3f   :  { %v940_v5 = vsel %vm932_vm14, %v919_v59, %v922_v60  ;;  %v944_v6 = vsel %vm932_vm14, %v922_v60, %v925_v63  ;;  %v941_v10 = vsel %vm935_vm15, %v928_v0, 920167782  ;;  %v937_v14 = vsel %vm935_vm15, %v925_v63, 2102212464 }
  0x40   :  { %v945_v11 = vsel %vm935_vm15, %v931_v2, 1326507024  ;;  %v942_v15 = vsel %vm934_vm0, %v925_v63, %v941_v10  ;;  %v936_v42 = vsel %vm932_vm14, %v916_v9, %v919_v59  ;;  %v938_v35 = vsel %vm934_vm0, %v922_v60, %v937_v14 }
  0x41   :  { %v946_v16 = vsel %vm934_vm0, %v928_v0, %v945_v11  ;;  %v943_v18 = vsel %vm933_vm1, %v940_v5, %v942_v15  ;;  %v2039_v44 = vor.u32 %v285_v58, %v284_v37  ;;  %v2041_v46 = vor.u32 %v288_v3, %v287_v49 }
  0x42   :  { %v947_v20 = vsel %vm933_vm1, %v944_v6, %v946_v16  ;;  %v973_v39 = vand.u32 65535, %v943_v18  ;;  %v974_v40 = vshrl.u32 %v943_v18, 16  ;;  %v292_v51 = vor.u32 %v291_v13, %v290_v7 }
  0x43   :  { %v951_v28 = vand.u32 65535, %v947_v20  ;;  %v952_v38 = vshrl.u32 %v947_v20, 16  ;;  %v295_v57 = vor.u32 %v294_v24, %v293_v21  ;;  %vm296_vm2 = vcmp.lt.s32.totalorder %v1975_v25, 1 }
  0x44   :  { %v975_v53 = vmul.u32 %v973_v39, %v1983_v29  ;;  %v976_v54 = vmul.u32 %v974_v40, %v1983_v29  ;;  %v977_v55 = vmul.u32 %v973_v39, %v1991_v33  ;;  %v978_v49 = vmul.u32 %v974_v40, %v1991_v33 }
  0x45   :  { %v953_v50 = vmul.u32 %v951_v28, %v1983_v29  ;;  %v954_v23 = vmul.u32 %v952_v38, %v1983_v29  ;;  %v955_v30 = vmul.u32 %v951_v28, %v1991_v33  ;;  %v956_v59 = vmul.u32 %v952_v38, %v1991_v33 }
  0x46   :  { %v979_v60 = vshll.u32 %v976_v54, 16  ;;  %v981_v63 = vshll.u32 %v977_v55, 16  ;;  %vm297_vm3 = vcmp.lt.s32.totalorder %v1975_v25, 2  ;;  %vm298_vm5 = vcmp.lt.s32.totalorder %v1975_v25, 3 }
  0x47   :  { %v957_v37 = vshll.u32 %v954_v23, 16  ;;  %v959_v58 = vshll.u32 %v955_v30, 16  ;;  %v958_v0 = vshrl.u32 %v954_v23, 16  ;;  %v960_v29 = vshrl.u32 %v955_v30, 16 }
  0x48   :  { %v1860_v3 = vmov 0   ;;  %vm983_vm6 = vc.u32 %v975_v53, %v979_v60  ;;  %v985_v6 = vadd.s32 %v979_v60, %v975_v53  ;;  %vm299_vm8 = vcmp.lt.s32.totalorder %v1975_v25, 4 }
  0x49   :  { %vm961_vm4 = vc.u32 %v953_v50, %v957_v37  ;;  %v963_v2 = vadd.s32 %v957_v37, %v953_v50  ;;  %v984_v9 = vsel %vm983_vm6, 1, %v1860_v3  ;;  %v980_v10 = vshrl.u32 %v976_v54, 16 }
  0x4a   :  { %v962_v5 = vsel %vm961_vm4, 1, %v1860_v3  ;;  %v986_v11 = vadd.s32 %v984_v9, %v978_v49  ;;  %vm987_vm9 = vc.u32 %v985_v6, %v981_v63  ;;  %v982_v14 = vshrl.u32 %v977_v55, 16 }
  0x4b   :  { %v964_v7 = vadd.s32 %v962_v5, %v956_v59  ;;  %vm965_vm7 = vc.u32 %v963_v2, %v959_v58  ;;  %v988_v15 = vsel %vm987_vm9, 1, %v1860_v3  ;;  %v304_v16 = vsel %vm296_vm2, %v2027_v17, %v2039_v44 }
  0x4c   :  { %v966_v33 = vsel %vm965_vm7, 1, %v1860_v3  ;;  %v990_v18 = vadd.s32 %v988_v15, %v986_v11  ;;  %v305_v20 = vsel %vm299_vm8, %v292_v51, 920167782  ;;  %v308_v21 = vsel %vm296_vm2, %v2039_v44, %v2041_v46 }
  0x4d   :  { %v968_v13 = vadd.s32 %v966_v33, %v964_v7  ;;  %v309_v24 = vsel %vm299_vm8, %v295_v57, 1326507024  ;;  %v2071_v38 = vadd.s32 %v985_v6, %v981_v63  ;;  %v306_v39 = vsel %vm298_vm5, %v2041_v46, %v305_v20 }
  0x4e   :  { %v310_v40 = vsel %vm298_vm5, %v292_v51, %v309_v24  ;;  %v939_v50 = vsel %vm933_vm1, %v936_v42, %v938_v35  ;;  %v991_v23 = vadd.s32 %v990_v18, %v980_v10  ;;  %v307_v30 = vsel %vm297_vm3, %v304_v16, %v306_v39 }
  0x4f   :  { %v969_v28 = vadd.s32 %v968_v13, %v958_v0  ;;  %v311_v53 = vsel %vm297_vm3, %v308_v21, %v310_v40  ;;  %v337_v59 = vand.u32 65535, %v307_v30  ;;  %v338_v58 = vshrl.u32 %v307_v30, 16 }
  0x50   :  { %v315_v55 = vand.u32 65535, %v311_v53  ;;  %v316_v57 = vshrl.u32 %v311_v53, 16  ;;  %v992_v37 = vadd.s32 %v991_v23, %v982_v14  ;;  %v1750_v49 = vadd.s32 4294967169, %v1980_v27 }
  0x51   :  { %v2084_v54 = vadd.s32 %v969_v28, %v960_v29  ;;  %v993_v51 = vmul.u32 %v1973_v22, %v939_v50  ;;  %v300_v60 = vsel %vm296_vm2, %v2001_v47, %v2027_v17  ;;  %v1055_v0 = vand.u32 2147483647, %v1966_v12 }
  0x52   :  { %v317_v32 = vmul.u32 %v315_v55, %v1978_v26  ;;  %v318_v42 = vmul.u32 %v316_v57, %v1978_v26  ;;  %v996_v35 = vadd.s32 1, %v992_v37  ;;  %v319_v63 = vmul.u32 %v315_v55, %v1986_v31 }
  0x53   :  { %vm995_vm10 = vc.u32 %v2084_v54, %v2071_v38  ;;  %v320_v27 = vmul.u32 %v316_v57, %v1986_v31  ;;  %v340_v2 = vmul.u32 %v338_v58, %v1978_v26  ;;  %v341_v29 = vmul.u32 %v337_v59, %v1986_v31 }
  0x54   :  { %v321_v22 = vshll.u32 %v318_v42, 16  ;;  %v997_v5 = vsel %vm995_vm10, %v996_v35, %v992_v37  ;;  %v301_v6 = vsel %vm299_vm8, %v2041_v46, 2102212464  ;;  %v323_v7 = vshll.u32 %v319_v63, 16 }
  0x55   :  { %v339_v9 = vmul.u32 %v337_v59, %v1978_v26  ;;  %v998_v47 = vadd.s32 %v997_v5, %v993_v51  ;;  %v1065_v33 = vadd.s32 1, %v1750_v49  ;;  %v322_v10 = vshrl.u32 %v318_v42, 16 }
  0x56   :  { %vm325_vm11 = vc.u32 %v317_v32, %v321_v22  ;;  %v327_v17 = vadd.s32 %v321_v22, %v317_v32  ;;  %v342_v13 = vmul.u32 %v338_v58, %v1986_v31  ;;  %v343_v14 = vshll.u32 %v340_v2, 16 }
  0x57   :  { %v326_v11 = vsel %vm325_vm11, 1, %v1860_v3  ;;  %v999_v15 = vadd.s32 536870912, %v998_v47  ;;  %v345_v18 = vshll.u32 %v341_v29, 16  ;;  %v324_v20 = vshrl.u32 %v319_v63, 16 }
  0x58   :  { %v328_v16 = vadd.s32 %v326_v11, %v320_v27  ;;  %vm329_vm12 = vc.u32 %v327_v17, %v323_v7  ;;  %vm347_vm13 = vc.u32 %v339_v9, %v343_v14  ;;  %v349_v21 = vadd.s32 %v343_v14, %v339_v9 }
  0x59   :  { %v330_v46 = vsel %vm329_vm12, 1, %v1860_v3  ;;  %v1000_v26 = vshrl.u32 %v999_v15, 30  ;;  %v348_v28 = vsel %vm347_vm13, 1, %v1860_v3  ;;  %vm1066_vm14 = vcmp.gt.s32.totalorder %v1065_v33, 0 }
  0x5a   :  { %v332_v24 = vadd.s32 %v330_v46, %v328_v16  ;;  %v344_v39 = vshrl.u32 %v340_v2, 16  ;;  %v350_v40 = vadd.s32 %v348_v28, %v342_v13  ;;  %vm351_vm15 = vc.u32 %v349_v21, %v345_v18 }
  0x5b   :  { %v1067_v50 = vsel %vm1066_vm14, %v1065_v33, 0  ;;  %v1001_v31 = vshll.u32 %v1000_v26, 30  ;;  %v302_v23 = vsel %vm298_vm5, %v2039_v44, %v301_v6  ;;  %v352_v53 = vsel %vm351_vm15, 1, %v1860_v3 }
  0x5c   :  { %v333_v30 = vadd.s32 %v332_v24, %v322_v10  ;;  %v346_v55 = vshrl.u32 %v341_v29, 16  ;;  %v354_v57 = vadd.s32 %v352_v53, %v350_v40  ;;  %v1069_v59 = vand.u32 31, %v1067_v50 }
  0x5d   :  { %v1002_v37 = vsub.s32 %v998_v47, %v1001_v31  ;;  %v2115_v49 = vadd.s32 %v349_v21, %v345_v18  ;;  %v303_v51 = vsel %vm297_vm3, %v300_v60, %v302_v23  ;;  %v1062_v42 = vand.u32 8388607, %v1055_v0 }
  0x5e   :  { %v2113_v58 = vadd.s32 %v333_v30, %v324_v20  ;;  %v355_v32 = vadd.s32 %v354_v57, %v344_v39  ;;  %v1070_v35 = vsub.s32 32, %v1069_v59  ;;  %v357_v22 = vmul.u32 %v1970_v19, %v303_v51 }
  0x5f   :  { %vm1003_vm0 = vcmp.lt.s32.totalorder %v1002_v37, 0  ;;  %v1004_v44 = vsub.s32 0, %v1002_v37  ;;  %vm902_vm2 = vcmp.lt.s32.totalorder %v1958_v4, 0  ;;  %v1063_v25 = vor.u32 8388608, %v1062_v42 }
  0x60   :  { %v356_v63 = vadd.s32 %v355_v32, %v346_v55  ;;  %vm359_vm1 = vc.u32 %v2113_v58, %v2115_v49  ;;  %vm2127_vm3 = vcmp.le.f32.partialorder %v900_v8, 0.7853982  ;;  %v994_v5 = vadd.s32 %v2071_v38, %v2084_v54 }
  0x61   :  { %v1005_v27 = vsel %vm1003_vm0, %v1004_v44, %v1002_v37  ;;  %v1024_v6 = vsub.s32 4, %v1000_v26  ;;  %v1081_v19 = vshll.u32 %v1857_v43, %v1069_v59  ;;  %v1082_v7 = vshrl.u32 %v1858_v45, %v1070_v35 }
  0x62   :  { %v1006_v2 = vclz %v1005_v27  ;;  %v360_v29 = vadd.s32 1, %v356_v63  ;;  %v2135_v17 = vshrl.u32 %v1067_v50, 5  ;;  %v1072_v33 = vshll.u32 %v1854_v34, %v1069_v59 }
  0x63   :  { %v1073_v8 = vshrl.u32 %v1855_v36, %v1070_v35  ;;  %v1075_v11 = vshll.u32 %v1855_v36, %v1069_v59  ;;  %v1076_v13 = vshrl.u32 %v1856_v41, %v1070_v35  ;;  %v1078_v38 = vshll.u32 %v1856_v41, %v1069_v59 }
  0x64   :  { %v1748_v9 = vadd.s32 4294967294, %v1006_v2  ;;  %v361_v47 = vsel %vm359_vm1, %v360_v29, %v356_v63  ;;  %v1079_v54 = vshrl.u32 %v1857_v43, %v1070_v35  ;;  %v1084_v14 = vshll.u32 %v1858_v45, %v1069_v59 }
  0x65   :  { %v362_v10 = vadd.s32 %v361_v47, %v357_v22  ;;  %v1083_v18 = vor.u32 %v1082_v7, %v1081_v19  ;;  %v1085_v20 = vshrl.u32 %v1859_v56, %v1070_v35  ;;  %vm1090_vm5 = vcmp.lt.s32.totalorder %v2135_v17, 4 }
  0x66   :  { %vm1749_vm4 = vcmp.lt.s32.totalorder %v1748_v9, 0  ;;  %v1025_v28 = vsel %vm902_vm2, %v1024_v6, %v1000_v26  ;;  %v1074_v40 = vor.u32 %v1073_v8, %v1072_v33  ;;  %v1077_v50 = vor.u32 %v1076_v13, %v1075_v11 }
  0x67   :  { %v1009_v15 = vsel %vm1749_vm4, 0, %v1748_v9  ;;  %v363_v16 = vadd.s32 536870912, %v362_v10  ;;  %vm266_vm6 = vcmp.lt.s32.totalorder %v1949_v61, 0  ;;  %v1080_v30 = vor.u32 %v1079_v54, %v1078_v38 }
  0x68   :  { %v1010_v46 = vsub.s32 32, %v1009_v15  ;;  %v1011_v21 = vshll.u32 %v1002_v37, %v1009_v15  ;;  %v1014_v24 = vsub.s32 4294967266, %v1009_v15  ;;  %vm1087_vm7 = vcmp.lt.s32.totalorder %v2135_v17, 1 }
  0x69   :  { %v364_v39 = vshrl.u32 %v363_v16, 30  ;;  %v1086_v55 = vor.u32 %v1085_v20, %v1084_v14  ;;  %vm1089_vm8 = vcmp.lt.s32.totalorder %v2135_v17, 3  ;;  %v1096_v57 = vsel %vm1090_vm5, %v1083_v18, 920167782 }
  0x6a   :  { %v1012_v31 = vshrl.u32 %v994_v5, %v1010_v46  ;;  %v1015_v23 = vadd.s32 127, %v1014_v24  ;;  %v1027_v26 = vsel %vm2127_vm3, 0, %v1025_v28  ;;  %v2155_v51 = vshll.u32 %v1063_v25, 8 }
  0x6b   :  { %v365_v53 = vshll.u32 %v364_v39, 30  ;;  %vm2159_vm9 = vcmp.le.f32.partialorder %v264_v1, 0.7853982  ;;  %v1071_v44 = vshrl.u32 %v1854_v34, %v1070_v35  ;;  %vm1088_vm10 = vcmp.lt.s32.totalorder %v2135_v17, 2 }
  0x6c   :  { %v1013_v59 = vor.u32 %v1012_v31, %v1011_v21  ;;  %v1016_v37 = vshll.u32 %v1015_v23, 23  ;;  %v1095_v63 = vsel %vm1087_vm7, %v1074_v40, %v1077_v50  ;;  %v1097_v2 = vsel %vm1089_vm8, %v1080_v30, %v1096_v57 }
  0x6d   :  { %v2163_v42 = vsub.s32 %v362_v10, %v365_v53  ;;  %v1099_v1 = vsel %vm1087_vm7, %v1077_v50, %v1080_v30  ;;  %v388_v25 = vsub.s32 4, %v364_v39  ;;  %v1100_v35 = vsel %vm1090_vm5, %v1086_v55, 1326507024 }
  0x6e   :  { %v1017_v27 = vor.u32 4788187, %v1016_v37  ;;  %v1020_v22 = vcvt.s32.f32 %v1013_v59  ;;  %v1044_v6 = vadd.s32 3, %v1027_v26  ;;  %v1101_v19 = vsel %vm1089_vm8, %v1083_v18, %v1100_v35 }
  0x6f   :  { %vm367_vm11 = vcmp.lt.s32.totalorder %v2163_v42, 0  ;;  %v368_v29 = vsub.s32 0, %v2163_v42  ;;  %v1104_v7 = vand.u32 65535, %v2155_v51  ;;  %v1098_v47 = vsel %vm1088_vm10, %v1095_v63, %v1097_v2 }
  0x70   :  { %v1018_v5 = vand.u32 2147483647, %v1017_v27  ;;  %v1102_v33 = vsel %vm1088_vm10, %v1099_v1, %v1101_v19  ;;  %v1105_v10 = vshrl.u32 %v2155_v51, 16  ;;  %v358_v54 = vadd.s32 %v2115_v49, %v2113_v58 }
  0x71   :  { %v369_v9 = vsel %vm367_vm11, %v368_v29, %v2163_v42  ;;  %v1106_v13 = vand.u32 65535, %v1102_v33  ;;  %v1107_v38 = vshrl.u32 %v1102_v33, 16  ;;  %v2190_v14 = vsel %vm266_vm6, %v388_v25, %v364_v39 }
  0x72   :  { %v1021_v8 = vmul.f32 %v1020_v22, %v1018_v5  ;;  %v370_v11 = vclz %v369_v9  ;;  %v1092_v15 = vsel %vm1090_vm5, %v1080_v30, 2102212464  ;;  %v256_v16 = vmul.f32 %v1937_v48, %v1951_v62 }
  0x73   :  { %v2196_v20 = vand.u32 3, %v1044_v6  ;;  %v1109_v21 = vmul.u32 %v1107_v38, %v1104_v7  ;;  %v2200_v24 = vsel %vm1087_vm7, %v1071_v44, %v1074_v40  ;;  %v2202_v58 = vmul.u32 %v1106_v13, %v1105_v10 }
  0x74   :  { %v1022_v18 = vxor.u32 2147483648, %v1021_v8  ;;  %v1736_v46 = vadd.s32 4294967294, %v370_v11  ;;  %v1128_v49 = vand.u32 65535, %v1098_v47  ;;  %v1129_v28 = vshrl.u32 %v1098_v47, 16 }
  0x75   :  { %v391_v48 = vsel %vm2159_vm9, 0, %v2190_v14  ;;  %v2211_v62 = vsel %vm1089_vm8, %v1077_v50, %v1092_v15  ;;  %v1108_v23 = vmul.u32 %v1106_v13, %v1104_v7  ;;  %v1112_v30 = vshll.u32 %v1109_v21, 16 }
  0x76   :  { %v1023_v39 = vsel %vm902_vm2, %v1022_v18, %v1021_v8  ;;  %vm1737_vm12 = vcmp.lt.s32.totalorder %v1736_v46, 0  ;;  %v1114_v37 = vshll.u32 %v2202_v58, 16  ;;  %v1130_v26 = vmul.u32 %v1128_v49, %v1104_v7 }
  0x77   :  { %v2216_v40 = vsel %vm2127_vm3, %v1958_v4, %v1023_v39  ;;  %v373_v31 = vsel %vm1737_vm12, 0, %v1736_v46  ;;  %v1131_v50 = vmul.u32 %v1129_v28, %v1104_v7  ;;  %v2222_v44 = vmul.u32 %v1128_v49, %v1105_v10 }
  0x78   :  { %v1028_v53 = vmul.f32 %v2216_v40, %v2216_v40  ;;  %v374_v55 = vsub.s32 32, %v373_v31  ;;  %v375_v57 = vshll.u32 %v2163_v42, %v373_v31  ;;  %v378_v59 = vsub.s32 4294967266, %v373_v31 }
  0x79   :  { %v1111_v2 = vmul.u32 %v1107_v38, %v1105_v10  ;;  %v1113_v1 = vshrl.u32 %v1109_v21, 16  ;;  %vm1116_vm13 = vc.u32 %v1108_v23, %v1112_v30  ;;  %v1118_v29 = vadd.s32 %v1112_v30, %v1108_v23 }
  0x7a   :  { %v1029_v63 = vmul.f32 -0.001358992, %v1028_v53  ;;  %v1036_v60 = vmul.f32 -0.00019511016, %v1028_v53  ;;  %v376_v27 = vshrl.u32 %v358_v54, %v374_v55  ;;  %v379_v22 = vadd.s32 127, %v378_v59 }
  0x7b   :  { %vm1050_vm14 = vcmp.eq.s32.totalorder %v2196_v20, 2  ;;  %v1117_v42 = vsel %vm1116_vm13, 1, %v1860_v3  ;;  %vm1120_vm15 = vc.u32 %v1118_v29, %v1114_v37  ;;  %v1133_v19 = vmul.u32 %v1129_v28, %v1105_v10 }
  0x7c   :  { %v1030_v25 = vadd.f32 0.041655596, %v1029_v63  ;;  %v1037_v35 = vadd.f32 0.008332121, %v1036_v60  ;;  %v377_v5 = vor.u32 %v376_v27, %v375_v57  ;;  %v380_v6 = vshll.u32 %v379_v22, 23 }
  0x7d   :  { %v1134_v7 = vshll.u32 %v1131_v50, 16  ;;  %vm1047_vm0 = vcmp.eq.s32.totalorder %v2196_v20, 0  ;;  %v1115_v11 = vshrl.u32 %v2202_v58, 16  ;;  %v1119_v13 = vadd.s32 %v1117_v42, %v1111_v2 }
  0x7e   :  { %v1031_v9 = vmul.f32 %v1030_v25, %v1028_v53  ;;  %v1038_v47 = vmul.f32 %v1037_v35, %v1028_v53  ;;  %v381_v33 = vor.u32 4788187, %v380_v6  ;;  %v384_v8 = vcvt.s32.f32 %v377_v5 }
  0x7f   :  { %v1121_v38 = vsel %vm1120_vm15, 1, %v1860_v3  ;;  %v1136_v54 = vshll.u32 %v2222_v44, 16  ;;  %vm1046_vm1 = vcmp.lt.s32.totalorder %v2196_v20, 2  ;;  %vm1138_vm2 = vc.u32 %v1130_v26, %v1134_v7 }
  0x80   :  { %v1032_v15 = vadd.f32 -0.4999988, %v1031_v9  ;;  %v1039_v18 = vadd.f32 -0.16666654, %v1038_v47  ;;  %v382_v46 = vand.u32 2147483647, %v381_v33  ;;  %vm1043_vm3 = vweird.f32 %v1958_v4 }
  0x81   :  { %v1123_v10 = vadd.s32 %v1121_v38, %v1119_v13  ;;  %v1139_v21 = vsel %vm1138_vm2, 1, %v1860_v3  ;;  %v1140_v49 = vadd.s32 %v1134_v7, %v1130_v26  ;;  %v2234_v28 = vadd.f32 %v1944_v52, %v256_v16 }
  0x82   :  { %v1033_v58 = vmul.f32 %v1032_v15, %v1028_v53  ;;  %v1040_v39 = vmul.f32 %v1039_v18, %v1028_v53  ;;  %v385_v31 = vmul.f32 %v384_v8, %v382_v46  ;;  %v1141_v23 = vadd.s32 %v1139_v21, %v1133_v19 }
  0x83   :  { %v1124_v30 = vadd.s32 %v1123_v10, %v1113_v1  ;;  %v1135_v55 = vshrl.u32 %v1131_v50, 16  ;;  %v1137_v57 = vshrl.u32 %v2222_v44, 16  ;;  %vm1142_vm4 = vc.u32 %v1140_v49, %v1136_v54 }
  0x84   :  { %v1034_v59 = vadd.f32 1.0, %v1033_v58  ;;  %v1041_v37 = vadd.f32 1.0, %v1040_v39  ;;  %v386_v63 = vxor.u32 2147483648, %v385_v31  ;;  %v1143_v60 = vsel %vm1142_vm4, 1, %v1860_v3 }
  0x85   :  { %v1125_v27 = vadd.s32 %v1124_v30, %v1115_v11  ;;  %v1144_v22 = vadd.s32 %v1140_v49, %v1136_v54  ;;  %v1145_v26 = vadd.s32 %v1143_v60, %v1141_v23  ;;  %v422_v52 = vand.u32 2139095040, %v2234_v28  ;;  %v33_v54 = vld [vmem:[%s3020_s1 + $0x18] sm:$0xff] }
  0x86   :  { %v1042_v16 = vmul.f32 %v1041_v37, %v2216_v40  ;;  %v1051_v53 = vxor.u32 2147483648, %v1034_v59  ;;  %v387_v2 = vsel %vm266_vm6, %v386_v63, %v385_v31  ;;  %v1094_v50 = vsel %vm1088_vm10, %v2200_v24, %v2211_v62 }
  0x87   :  { %v390_v44 = vsel %vm2159_vm9, %v1949_v61, %v387_v2  ;;  %v408_v1 = vadd.s32 3, %v391_v48  ;;  %v1146_v29 = vadd.s32 %v1145_v26, %v1135_v55  ;;  %v419_v40 = vand.u32 2147483647, %v2234_v28 }
  0x88   :  { %v1048_v25 = vxor.u32 2147483648, %v1042_v16  ;;  %v1052_v35 = vsel %vm1050_vm14, %v1051_v53, %v1042_v16  ;;  %v392_v5 = vmul.f32 %v390_v44, %v390_v44  ;;  %v423_v6 = vshrl.u32 %v422_v52, 23 }
  0x89   :  { %vm1520_vm5 = vcmask 261120   ;;  %v1147_v17 = vadd.s32 %v1146_v29, %v1137_v57  ;;  %v1148_v24 = vmul.u32 %v2155_v51, %v1094_v50  ;;  %vm1150_vm6 = vc.u32 %v1125_v27, %v1144_v22 }
  0x8a   :  { %v1049_v32 = vsel %vm1047_vm0, %v1034_v59, %v1048_v25  ;;  %v393_v14 = vmul.f32 -0.001358992, %v392_v5  ;;  %v400_v48 = vmul.f32 -0.00019511016, %v392_v5  ;;  %v1738_v62 = vadd.s32 4294967169, %v423_v6 }
  0x8b   :  { %v1053_v42 = vsel %vm1046_vm1, %v1049_v32, %v1052_v35  ;;  %v2263_v19 = vand.u32 3, %v408_v1  ;;  %v1151_v7 = vadd.s32 1, %v1147_v17  ;;  %v426_v9 = vand.u32 8388607, %v419_v40 }
  0x8c   :  { %v1054_v51 = vsel %vm1043_vm3, nan, %v1053_v42  ;;  %v394_v47 = vadd.f32 0.041655596, %v393_v14  ;;  %v401_v33 = vadd.f32 0.008332121, %v400_v48  ;;  %v429_v8 = vadd.s32 1, %v1738_v62 }
  0x8d   :  { %1759 = vmatmul.msk.f32.vlgmr.msra.gmra.mxu0 %vm1520_vm5, %v1054_v51  ;;  %v1152_v11 = vsel %vm1150_vm6, %v1151_v7, %v1147_v17  ;;  %vm411_vm8 = vcmp.eq.s32.totalorder %v2263_v19, 0  ;;  %vm410_vm9 = vcmp.lt.s32.totalorder %v2263_v19, 2  ;;  %v427_v10 = vor.u32 8388608, %v426_v9 }
  0x8e   :  { %v395_v13 = vmul.f32 %v394_v47, %v392_v5  ;;  %v402_v20 = vmul.f32 %v401_v33, %v392_v5  ;;  %v1153_v38 = vadd.s32 %v1152_v11, %v1148_v24  ;;  %vm430_vm7 = vcmp.gt.s32.totalorder %v429_v8, 0 }
  0x8f   :  { %v431_v4 = vsel %vm430_vm7, %v429_v8, 0  ;;  %vm407_vm10 = vweird.f32 %v1949_v61  ;;  %vm414_vm11 = vcmp.eq.s32.totalorder %v2263_v19, 2  ;;  %v2279_v21 = vadd.s32 %v1144_v22, %v1125_v27 }
  0x90   :  { %v396_v15 = vadd.f32 -0.4999988, %v395_v13  ;;  %v403_v18 = vadd.f32 -0.16666654, %v402_v20  ;;  %v1154_v46 = vadd.s32 536870912, %v1153_v38  ;;  %v433_v49 = vand.u32 31, %v431_v4 }
  0x91   :  { %v1726_v58 = vmul.f32 -1.442695, %v33_v54  ;;  %v143_v30 = vstv %s2257_s16  ;;  %v2282_v55 = vshrl.u32 %v431_v4, 5  ;;  %v2286_v52 = vshll.u32 %v427_v10, 8 }
  0x92   :  { %v397_v39 = vmul.f32 %v396_v15, %v392_v5  ;;  %v404_v31 = vmul.f32 %v403_v18, %v392_v5  ;;  %v1155_v23 = vshrl.u32 %v1154_v46, 30  ;;  %v434_v57 = vsub.s32 32, %v433_v49 }
  0x93   :  { %v436_v59 = vshll.u32 %v1854_v34, %v433_v49  ;;  %v439_v37 = vshll.u32 %v1855_v36, %v433_v49  ;;  %v442_v16 = vshll.u32 %v1856_v41, %v433_v49  ;;  %v163_v53 = vstv %s2270_s17 }
  0x94   :  { %v398_v63 = vadd.f32 1.0, %v397_v39  ;;  %v405_v60 = vadd.f32 1.0, %v404_v31  ;;  %v1156_v26 = vshll.u32 %v1155_v23, 30  ;;  %v437_v27 = vshrl.u32 %v1855_v36, %v434_v57 }
  0x95   :  { %v440_v22 = vshrl.u32 %v1856_v41, %v434_v57  ;;  %vm1057_vm12 = vcmp.lt.s32.totalorder %v1966_v12, 0  ;;  %v443_v29 = vshrl.u32 %v1857_v43, %v434_v57  ;;  %v1179_v25 = vsub.s32 4, %v1155_v23 }
  0x96   :  { %v406_v2 = vmul.f32 %v405_v60, %v390_v44  ;;  %v415_v50 = vxor.u32 2147483648, %v398_v63  ;;  %v1157_v1 = vsub.s32 %v1153_v38, %v1156_v26  ;;  %v438_v35 = vor.u32 %v437_v27, %v436_v59 }
  0x97   :  { %v441_v5 = vor.u32 %v440_v22, %v439_v37  ;;  %vm451_vm13 = vcmp.lt.s32.totalorder %v2282_v55, 1  ;;  %v445_v32 = vshll.u32 %v1857_v43, %v433_v49  ;;  %v446_v44 = vshrl.u32 %v1858_v45, %v434_v57 }
  0x98   :  { %v412_v6 = vxor.u32 2147483648, %v406_v2  ;;  %v416_v17 = vsel %vm414_vm11, %v415_v50, %v406_v2  ;;  %vm1158_vm14 = vcmp.lt.s32.totalorder %v1157_v1, 0  ;;  %v1159_v24 = vsub.s32 0, %v1157_v1 }
  0x99   :  { %v448_v14 = vshll.u32 %v1858_v45, %v433_v49  ;;  %v449_v48 = vshrl.u32 %v1859_v56, %v434_v57  ;;  %v444_v7 = vor.u32 %v443_v29, %v442_v16  ;;  %vm453_vm15 = vcmp.lt.s32.totalorder %v2282_v55, 3 }
  0x9a   :  { %v413_v62 = vsel %vm411_vm8, %v398_v63, %v412_v6  ;;  %v1160_v42 = vsel %vm1158_vm14, %v1159_v24, %v1157_v1  ;;  %v447_v47 = vor.u32 %v446_v44, %v445_v32  ;;  %vm454_vm0 = vcmp.lt.s32.totalorder %v2282_v55, 4 }
  0x9b   :  { %v417_v9 = vsel %vm410_vm9, %v413_v62, %v416_v17  ;;  %v1161_v51 = vclz %v1160_v42  ;;  %v450_v33 = vor.u32 %v449_v48, %v448_v14  ;;  %v468_v11 = vand.u32 65535, %v2286_v52 }
  0x9c   :  { %v418_v8 = vsel %vm407_vm10, nan, %v417_v9  ;;  %1801 = vpow2.f32 %v1726_v58  ;;  %vm452_vm1 = vcmp.lt.s32.totalorder %v2282_v55, 2  ;;  %v459_v19 = vsel %vm451_vm13, %v438_v35, %v441_v5 }
  0x9d   :  { %1763 = vmatmul.msk.f32.vlgmr.msra.gmra.mxu1 %vm1520_vm5, %v418_v8  ;;  %v1751_v13 = vadd.s32 4294967294, %v1161_v51  ;;  %v460_v20 = vsel %vm454_vm0, %v447_v47, 920167782  ;;  %v463_v38 = vsel %vm451_vm13, %v441_v5, %v444_v7  ;;  %v464_v54 = vsel %vm454_vm0, %v450_v33, 1326507024 }
  0x9e   :  { %v461_v61 = vsel %vm453_vm15, %v444_v7, %v460_v20  ;;  %v2324_v4 = vsub.f32 %v163_v53, %v143_v30  ;;  %v1180_v15 = vsel %vm1057_vm12, %v1179_v25, %v1155_v23  ;;  %v435_v18 = vshrl.u32 %v1854_v34, %v434_v57 }
  0x9f   :  { %vm1752_vm2 = vcmp.lt.s32.totalorder %v1751_v13, 0  ;;  %v469_v46 = vshrl.u32 %v2286_v52, 16  ;;  %v456_v49 = vsel %vm454_vm0, %v444_v7, 2102212464  ;;  %v462_v58 = vsel %vm452_vm1, %v459_v19, %v461_v61 }
  0xa0   :  { %v1164_v10 = vsel %vm1752_vm2, 0, %v1751_v13  ;;  %v465_v39 = vsel %vm453_vm15, %v447_v47, %v464_v54  ;;  %vm2340_vm3 = vcmp.le.f32.partialorder %v1055_v0, 0.7853982  ;;  %v492_v26 = vand.u32 65535, %v462_v58 }
  0xa1   :  { %v1165_v31 = vsub.s32 32, %v1164_v10  ;;  %v1166_v59 = vshll.u32 %v1157_v1, %v1164_v10  ;;  %v1169_v37 = vsub.s32 4294967266, %v1164_v10  ;;  %v466_v23 = vsel %vm452_vm1, %v463_v38, %v465_v39 }
  0xa2   :  { %v1802_v63 = vpop.eup %1801  ;;  %v470_v60 = vand.u32 65535, %v466_v23  ;;  %1803 = vrcp.f32 %v2324_v4  ;;  %v1182_v16 = vsel %vm2340_vm3, 0, %v1180_v15  ;;  %v471_v53 = vshrl.u32 %v466_v23, 16 }
  0xa3   :  { %v1167_v27 = vshrl.u32 %v2279_v21, %v1165_v31  ;;  %v1170_v22 = vadd.s32 127, %v1169_v37  ;;  %v455_v2 = vsel %vm451_vm13, %v435_v18, %v438_v35  ;;  %v457_v0 = vsel %vm453_vm15, %v441_v5, %v456_v49 }
  0xa4   :  { %v474_v50 = vmul.u32 %v470_v60, %v469_v46  ;;  %v493_v1 = vshrl.u32 %v462_v58, 16  ;;  %v472_v6 = vmul.u32 %v470_v60, %v468_v11  ;;  %v473_v17 = vmul.u32 %v471_v53, %v468_v11 }
  0xa5   :  { %v1168_v29 = vor.u32 %v1167_v27, %v1166_v59  ;;  %v1171_v25 = vshll.u32 %v1170_v22, 23  ;;  %v2352_v24 = vadd.s32 3, %v1182_v16  ;;  %v475_v21 = vmul.u32 %v471_v53, %v469_v46 }
  0xa6   :  { %v496_v32 = vmul.u32 %v492_v26, %v469_v46  ;;  %v2354_v44 = vadd.f32 1.0, %v1802_v63  ;;  %v476_v62 = vshll.u32 %v473_v17, 16  ;;  %v478_v42 = vshll.u32 %v474_v50, 16 }
  0xa7   :  { %v1172_v14 = vor.u32 4788187, %v1171_v25  ;;  %v1175_v48 = vcvt.s32.f32 %v1168_v29  ;;  %v2360_v5 = vsel %vm452_vm1, %v455_v2, %v457_v0  ;;  %v479_v7 = vshrl.u32 %v474_v50, 16 }
  0xa8   :  { %v2356_v35 = vpop.eup %1803  ;;  %v494_v9 = vmul.u32 %v492_v26, %v468_v11  ;;  %v495_v51 = vmul.u32 %v493_v1, %v468_v11  ;;  %vm480_vm4 = vc.u32 %v472_v6, %v476_v62  ;;  %v482_v33 = vadd.s32 %v476_v62, %v472_v6 }
  0xa9   :  { %v1173_v47 = vand.u32 2147483647, %v1172_v14  ;;  %v497_v8 = vmul.u32 %v493_v1, %v469_v46  ;;  %v481_v13 = vsel %vm480_vm4, 1, %v1860_v3  ;;  %v500_v20 = vshll.u32 %v496_v32, 16 }
  0xaa   :  { %v498_v19 = vshll.u32 %v495_v51, 16  ;;  %1805 = vrcp.f32 %v2354_v44  ;;  %v477_v61 = vshrl.u32 %v473_v17, 16  ;;  %v483_v38 = vadd.s32 %v481_v13, %v475_v21 }
  0xab   :  { %v1176_v55 = vmul.f32 %v1175_v48, %v1173_v47  ;;  %vm484_vm6 = vc.u32 %v482_v33, %v478_v42  ;;  %v501_v54 = vshrl.u32 %v496_v32, 16  ;;  %v90_v49 = vand.u32 2147483647, %v2354_v44 }
  0xac   :  { %v485_v11 = vsel %vm484_vm6, 1, %v1860_v3  ;;  %vm502_vm7 = vc.u32 %v494_v9, %v498_v19  ;;  %v504_v15 = vadd.s32 %v498_v19, %v494_v9  ;;  %v499_v58 = vshrl.u32 %v495_v51, 16 }
  0xad   :  { %v1177_v18 = vxor.u32 2147483648, %v1176_v55  ;;  %v487_v46 = vadd.s32 %v485_v11, %v483_v38  ;;  %v503_v10 = vsel %vm502_vm7, 1, %v1860_v3  ;;  %v512_v31 = vmul.u32 %v2286_v52, %v2360_v5 }
  0xae   :  { %v505_v39 = vadd.s32 %v503_v10, %v497_v8  ;;  %vm506_vm8 = vc.u32 %v504_v15, %v500_v20  ;;  %vm86_vm9 = vweird.f32 %v2354_v44  ;;  %v2380_v26 = vadd.s32 %v504_v15, %v500_v20 }
  0xaf   :  { %v1178_v59 = vsel %vm1057_vm12, %v1177_v18, %v1176_v55  ;;  %v488_v37 = vadd.s32 %v487_v46, %v477_v61  ;;  %v507_v23 = vsel %vm506_vm8, 1, %v1860_v3  ;;  %v92_v22 = vand.u32 2147483648, %v2354_v44 }
  0xb0   :  { %v1806_v63 = vpop.eup %1805  ;;  %v1181_v60 = vsel %vm2340_vm3, %v1966_v12, %v1178_v59  ;;  %v509_v27 = vadd.s32 %v507_v23, %v505_v39  ;;  %vm2386_vm10 = vcmp.eq.f32.partialorder %v90_v49, 8.507059e+37  ;;  %v155_v50 = vstv %s2362_s20 }
  0xb1   :  { %v1183_v52 = vmul.f32 %v1181_v60, %v1181_v60  ;;  %v2383_v16 = vadd.s32 %v488_v37, %v479_v7  ;;  %v82_v53 = vmul.f32 %v1806_v63, %v2354_v44  ;;  %v171_v1 = vstv %s2366_s21 }
  0xb2   :  { %v510_v0 = vadd.s32 %v509_v27, %v499_v58  ;;  %v217_v57 = vmul.f32 %v2356_v35, %v2324_v4  ;;  %vm87_vm11 = vweird.f32 %v1806_v63  ;;  %vm221_vm12 = vweird.f32 %v2324_v4  ;;  %v34_v58 = vld [vmem:[%s3020_s1 + $0x20] sm:$0xff] }
  0xb3   :  { %v1184_v29 = vmul.f32 -0.001358992, %v1183_v52  ;;  %v1191_v25 = vmul.f32 -0.00019511016, %v1183_v52  ;;  %v83_v17 = vsub.f32 1.0, %v82_v53  ;;  %vm222_vm13 = vweird.f32 %v2356_v35  ;;  %vm2401_vm15 = vmor %vm86_vm9, %vm87_vm11 }
  0xb4   :  { %v511_v6 = vadd.s32 %v510_v0, %v501_v54  ;;  %v218_v21 = vsub.f32 1.0, %v217_v57  ;;  %vm514_vm14 = vc.u32 %v2383_v16, %v2380_v26  ;;  %v225_v48 = vand.u32 2147483647, %v2324_v4  ;;  %vm2411_vm0 = vmor %vm221_vm12, %vm222_vm13 }
  0xb5   :  { %v1185_v32 = vadd.f32 0.041655596, %v1184_v29  ;;  %v1192_v14 = vadd.f32 0.008332121, %v1191_v25  ;;  %v84_v42 = vmul.f32 %v1806_v63, %v83_v17  ;;  %v227_v9 = vand.u32 2147483648, %v2324_v4 }
  0xb6   :  { %v515_v62 = vadd.s32 1, %v511_v6  ;;  %v219_v7 = vmul.f32 %v2356_v35, %v218_v21  ;;  %v93_v33 = vor.u32 1.1754944e-38, %v92_v22  ;;  %v180_v8 = vsub.f32 %v171_v1, %v155_v50 }
  0xb7   :  { %v1186_v51 = vmul.f32 %v1185_v32, %v1183_v52  ;;  %v1193_v47 = vmul.f32 %v1192_v14, %v1183_v52  ;;  %v85_v19 = vadd.f32 %v1806_v63, %v84_v42  ;;  %v228_v55 = vor.u32 1.1754944e-38, %v227_v9 }
  0xb8   :  { %v516_v44 = vsel %vm514_vm14, %v515_v62, %v511_v6  ;;  %v220_v20 = vadd.f32 %v2356_v35, %v219_v7  ;;  %vm226_vm1 = vcmp.eq.f32.partialorder %v225_v48, 8.507059e+37  ;;  %v1200_v54 = vand.u32 3, %v2352_v24  ;;  %v2430_v24 = vld [vmem:[%s3020_s1] ss:$0 sm:$0xff] }
  0xb9   :  { %v1187_v61 = vadd.f32 -0.4999988, %v1186_v51  ;;  %v1194_v38 = vadd.f32 -0.16666654, %v1193_v47  ;;  %v517_v11 = vadd.s32 %v516_v44, %v512_v31  ;;  %v89_v15 = vsel %vm2401_vm15, %v1806_v63, %v85_v19  ;;  %v2438_v63 = vld [vmem:[%s3020_s1 + $0x1] ss:$0 sm:$0xff] }
  0xba   :  { %v224_v4 = vsel %vm2411_vm0, %v2356_v35, %v220_v20  ;;  %v94_v49 = vsel %vm2386_vm10, %v93_v33, %v89_v15  ;;  %vm1205_vm2 = vcmp.eq.s32.totalorder %v1200_v54, 2  ;;  %v1727_v22 = vmul.f32 -1.442695, %v34_v58 }
  0xbb   :  { %v1188_v18 = vmul.f32 %v1187_v61, %v1183_v52  ;;  %v1195_v46 = vmul.f32 %v1194_v38, %v1183_v52  ;;  %v518_v10 = vadd.s32 536870912, %v517_v11  ;;  %v229_v39 = vsel %vm226_vm1, %v228_v55, %v224_v4 }
  0xbc   :  { %v257_v31 = vmul.f32 %v2430_v24, %v94_v49  ;;  %v2433_v23 = vmul.f32 %v229_v39, %v180_v8  ;;  %vm1202_vm3 = vcmp.eq.s32.totalorder %v1200_v54, 0  ;;  %vm1201_vm4 = vcmp.lt.s32.totalorder %v1200_v54, 2 }
  0xbd   :  { %v1189_v35 = vadd.f32 1.0, %v1188_v18  ;;  %v1196_v59 = vadd.f32 1.0, %v1195_v46  ;;  %v519_v37 = vshrl.u32 %v518_v10, 30  ;;  %vm1198_vm6 = vweird.f32 %v1966_v12 }
  0xbe   :  { %v2441_v27 = vadd.f32 %v2438_v63, %v257_v31  ;;  %v248_v0 = vmul.f32 %v2433_v23, %v143_v30  ;;  %v886_v1 = vmul.f32 %v2433_v23, %v94_v49  ;;  %1807 = vpow2.f32 %v1727_v22 }
  0xbf   :  { %v1197_v52 = vmul.f32 %v1196_v59, %v1181_v60  ;;  %v1206_v53 = vxor.u32 2147483648, %v1189_v35  ;;  %v520_v2 = vshll.u32 %v519_v37, 30  ;;  %v543_v14 = vsub.s32 4, %v519_v37 }
  0xc0   :  { %v577_v57 = vand.u32 2139095040, %v2441_v27  ;;  %v2451_v17 = vsub.f32 %v155_v50, %v248_v0  ;;  %vm421_vm8 = vcmp.lt.s32.totalorder %v2234_v28, 0  ;;  %v574_v51 = vand.u32 2147483647, %v2441_v27 }
  0xc1   :  { %v1203_v29 = vxor.u32 2147483648, %v1197_v52  ;;  %v1207_v25 = vsel %vm1205_vm2, %v1206_v53, %v1197_v52  ;;  %v521_v6 = vsub.s32 %v517_v11, %v520_v2  ;;  %v544_v9 = vsel %vm421_vm8, %v543_v14, %v519_v37 }
  0xc2   :  { %v578_v60 = vshrl.u32 %v577_v57, 23  ;;  %v890_v48 = vadd.f32 %v886_v1, %v2451_v17  ;;  %vm2465_vm10 = vcmp.le.f32.partialorder %v419_v40, 0.7853982  ;;  %v513_v44 = vadd.s32 %v2380_v26, %v2383_v16 }
  0xc3   :  { %v1204_v21 = vsel %vm1202_vm3, %v1189_v35, %v1203_v29  ;;  %vm522_vm7 = vcmp.lt.s32.totalorder %v521_v6, 0  ;;  %v523_v32 = vsub.s32 0, %v521_v6  ;;  %v546_v20 = vsel %vm2465_vm10, 0, %v544_v9 }
  0xc4   :  { %v1208_v30 = vsel %vm1201_vm4, %v1204_v21, %v1207_v25  ;;  %v1741_v62 = vadd.s32 4294967169, %v578_v60  ;;  %v894_v50 = vmul.f32 %v2430_v24, %v890_v48  ;;  %v1808_v47 = vpop.eup %1807  ;;  %v2477_v11 = vand.u32 8388607, %v574_v51 }
  0xc5   :  { %v1209_v42 = vsel %vm1198_vm6, nan, %v1208_v30  ;;  %v524_v5 = vsel %vm522_vm7, %v523_v32, %v521_v6  ;;  %v2481_v54 = vadd.f32 1.0, %v1808_v47  ;;  %v563_v39 = vadd.s32 3, %v546_v20 }
  0xc6   :  { %1760 = vmatmul.msk.f32.gmra.mxu0 %vm1520_vm5, %v1209_v42  ;;  %v525_v12 = vclz %v524_v5  ;;  %v584_v7 = vadd.s32 1, %v1741_v62  ;;  %v2461_v8 = vadd.f32 %v2438_v63, %v894_v50  ;;  %v582_v35 = vor.u32 8388608, %v2477_v11 }
  0xc7   :  { %1809 = vrcp.f32 %v2481_v54  ;;  %v2500_v25 = vand.u32 3, %v563_v39  ;;  %vm562_vm4 = vweird.f32 %v2234_v28 }
  0xc8   :  { %v1739_v33 = vadd.s32 4294967294, %v525_v12  ;;  %vm585_vm9 = vcmp.gt.s32.totalorder %v584_v7, 0  ;;  %v1210_v55 = vand.u32 2147483647, %v2461_v8  ;;  %v1213_v61 = vand.u32 2139095040, %v2461_v8 }
  0xc9   :  { %v586_v19 = vsel %vm585_vm9, %v584_v7, 0  ;;  %vm569_vm1 = vcmp.eq.s32.totalorder %v2500_v25, 2  ;;  %vm566_vm2 = vcmp.eq.s32.totalorder %v2500_v25, 0  ;;  %vm565_vm3 = vcmp.lt.s32.totalorder %v2500_v25, 2 }
  0xca   :  { %vm1740_vm11 = vcmp.lt.s32.totalorder %v1739_v33, 0  ;;  %v2479_v40 = vand.u32 31, %v586_v19  ;;  %v1214_v4 = vshrl.u32 %v1213_v61, 23  ;;  %v1217_v18 = vand.u32 8388607, %v1210_v55 }
  0xcb   :  { %v528_v38 = vsel %vm1740_vm11, 0, %v1739_v33  ;;  %v2502_v60 = vshrl.u32 %v586_v19, 5 }
  0xcc   :  { %v529_v15 = vsub.s32 32, %v528_v38  ;;  %v530_v26 = vshll.u32 %v521_v6, %v528_v38  ;;  %v533_v16 = vsub.s32 4294967266, %v528_v38  ;;  %v1753_v49 = vadd.s32 4294967169, %v1214_v4 }
  0xcd   :  { %v2486_v58 = vsub.s32 32, %v2479_v40  ;;  %v1218_v31 = vor.u32 8388608, %v1217_v18  ;;  %v591_v53 = vshll.u32 %v1854_v34, %v2479_v40  ;;  %v594_v0 = vshll.u32 %v1855_v36, %v2479_v40  ;;  %v2520_v50 = vpop.eup %1809 }
  0xce   :  { %v531_v46 = vshrl.u32 %v513_v44, %v529_v15  ;;  %v534_v10 = vadd.s32 127, %v533_v16  ;;  %v1220_v22 = vadd.s32 1, %v1753_v49  ;;  %v2506_v21 = vshll.u32 %v1856_v41, %v2479_v40 }
  0xcf   :  { %v2490_v52 = vshll.u32 %v1218_v31, 8  ;;  %v592_v2 = vshrl.u32 %v1855_v36, %v2486_v58  ;;  %v595_v29 = vshrl.u32 %v1856_v41, %v2486_v58  ;;  %v598_v12 = vshrl.u32 %v1857_v43, %v2486_v58 }
  0xd0   :  { %v532_v59 = vor.u32 %v531_v46, %v530_v26  ;;  %v535_v37 = vshll.u32 %v534_v10, 23  ;;  %vm1221_vm12 = vcmp.gt.s32.totalorder %v1220_v22, 0  ;;  %v2529_v61 = vshll.u32 %v1857_v43, %v2479_v40 }
  0xd1   :  { %v1222_v6 = vsel %vm1221_vm12, %v1220_v22, 0  ;;  %v2509_v48 = vand.u32 65535, %v2490_v52  ;;  %v2512_v62 = vshrl.u32 %v2490_v52, 16  ;;  %v2514_v42 = vor.u32 %v592_v2, %v591_v53 }
  0xd2   :  { %v536_v1 = vor.u32 4788187, %v535_v37  ;;  %v539_v57 = vcvt.s32.f32 %v532_v59  ;;  %v1223_v14 = vshrl.u32 %v1222_v6, 5  ;;  %v1224_v30 = vand.u32 31, %v1222_v6 }
  0xd3   :  { %v2516_v5 = vor.u32 %v595_v29, %v594_v0  ;;  %vm609_vm11 = vcmp.lt.s32.totalorder %v2502_v60, 4  ;;  %vm608_vm12 = vcmp.lt.s32.totalorder %v2502_v60, 3 }
  0xd4   :  { %v537_v32 = vand.u32 2147483647, %v536_v1  ;;  %v1225_v9 = vsub.s32 32, %v1224_v30  ;;  %v1227_v47 = vshll.u32 %v1854_v34, %v1224_v30  ;;  %v1230_v33 = vshll.u32 %v1855_v36, %v1224_v30 }
  0xd5   :  { %v1233_v44 = vshll.u32 %v1856_v41, %v1224_v30  ;;  %v1236_v19 = vshll.u32 %v1857_v43, %v1224_v30  ;;  %v1239_v20 = vshll.u32 %v1858_v45, %v1224_v30  ;;  %vm1242_vm13 = vcmp.lt.s32.totalorder %v1223_v14, 1 }
  0xd6   :  { %v540_v7 = vmul.f32 %v539_v57, %v537_v32  ;;  %v1228_v15 = vshrl.u32 %v1855_v36, %v1225_v9  ;;  %v1231_v26 = vshrl.u32 %v1856_v41, %v1225_v9  ;;  %v1226_v16 = vshrl.u32 %v1854_v34, %v1225_v9 }
  0xd7   :  { %v1234_v4 = vshrl.u32 %v1857_v43, %v1225_v9  ;;  %v1237_v18 = vshrl.u32 %v1858_v45, %v1225_v9  ;;  %v1240_v46 = vshrl.u32 %v1859_v56, %v1225_v9  ;;  %vm1244_vm14 = vcmp.lt.s32.totalorder %v1223_v14, 3 }
  0xd8   :  { %v541_v38 = vxor.u32 2147483648, %v540_v7  ;;  %v1229_v49 = vor.u32 %v1228_v15, %v1227_v47  ;;  %v1232_v39 = vor.u32 %v1231_v26, %v1230_v33  ;;  %vm1243_vm15 = vcmp.lt.s32.totalorder %v1223_v14, 2 }
  0xd9   :  { %v1235_v59 = vor.u32 %v1234_v4, %v1233_v44  ;;  %v1238_v37 = vor.u32 %v1237_v18, %v1236_v19  ;;  %v1241_v22 = vor.u32 %v1240_v46, %v1239_v20  ;;  %vm1245_vm0 = vcmp.lt.s32.totalorder %v1223_v14, 4 }
  0xda   :  { %v542_v10 = vsel %vm421_vm8, %v541_v38, %v540_v7  ;;  %v1250_v2 = vsel %vm1242_vm13, %v1229_v49, %v1232_v39  ;;  %v601_v30 = vshrl.u32 %v1858_v45, %v2486_v58  ;;  %v1246_v7 = vsel %vm1242_vm13, %v1226_v16, %v1229_v49 }
  0xdb   :  { %v2542_v31 = vsel %vm2465_vm10, %v2234_v28, %v542_v10  ;;  %v1247_v0 = vsel %vm1245_vm0, %v1235_v59, 2102212464  ;;  %v1251_v1 = vsel %vm1245_vm0, %v1238_v37, 920167782  ;;  %v1254_v57 = vsel %vm1242_vm13, %v1232_v39, %v1235_v59 }
  0xdc   :  { %v547_v53 = vmul.f32 %v2542_v31, %v2542_v31  ;;  %v1255_v29 = vsel %vm1245_vm0, %v1241_v22, 1326507024  ;;  %v1252_v13 = vsel %vm1244_vm14, %v1235_v59, %v1251_v1  ;;  %v1248_v9 = vsel %vm1244_vm14, %v1232_v39, %v1247_v0 }
  0xdd   :  { %v1253_v47 = vsel %vm1243_vm15, %v1250_v2, %v1252_v13  ;;  %v1256_v33 = vsel %vm1244_vm14, %v1238_v37, %v1255_v29  ;;  %v2559_v18 = vshll.u32 %v1858_v45, %v2479_v40  ;;  %v2562_v10 = vsel %vm1243_vm15, %v1246_v7, %v1248_v9 }
  0xde   :  { %v548_v6 = vmul.f32 -0.001358992, %v547_v53  ;;  %v555_v32 = vmul.f32 -0.00019511016, %v547_v53  ;;  %v1257_v20 = vsel %vm1243_vm15, %v1254_v57, %v1256_v33  ;;  %v1283_v38 = vand.u32 65535, %v1253_v47 }
  0xdf   :  { %v1261_v15 = vand.u32 65535, %v1257_v20  ;;  %v1262_v26 = vshrl.u32 %v1257_v20, 16  ;;  %v1284_v4 = vshrl.u32 %v1253_v47, 16  ;;  %v2565_v49 = vor.u32 %v598_v12, %v2506_v21 }
  0xe0   :  { %v549_v44 = vadd.f32 0.041655596, %v548_v6  ;;  %v556_v19 = vadd.f32 0.008332121, %v555_v32  ;;  %v1287_v22 = vmul.u32 %v1283_v38, %v2512_v62  ;;  %v1285_v14 = vmul.u32 %v1283_v38, %v2509_v48 }
  0xe1   :  { %v1263_v39 = vmul.u32 %v1261_v15, %v2509_v48  ;;  %v1264_v59 = vmul.u32 %v1262_v26, %v2509_v48  ;;  %v1265_v37 = vmul.u32 %v1261_v15, %v2512_v62  ;;  %v1286_v0 = vmul.u32 %v1284_v4, %v2509_v48 }
  0xe2   :  { %v550_v16 = vmul.f32 %v549_v44, %v547_v53  ;;  %v557_v46 = vmul.f32 %v556_v19, %v547_v53  ;;  %v1266_v21 = vmul.u32 %v1262_v26, %v2512_v62  ;;  %v1288_v57 = vmul.u32 %v1284_v4, %v2512_v62 }
  0xe3   :  { %v1267_v12 = vshll.u32 %v1264_v59, 16  ;;  %v1269_v1 = vshll.u32 %v1265_v37, 16  ;;  %v1268_v32 = vshrl.u32 %v1264_v59, 16  ;;  %v1289_v13 = vshll.u32 %v1286_v0, 16 }
  0xe4   :  { %v551_v40 = vadd.f32 -0.4999988, %v550_v16  ;;  %v558_v2 = vadd.f32 -0.16666654, %v557_v46  ;;  %v1270_v7 = vshrl.u32 %v1265_v37, 16  ;;  %v1291_v47 = vshll.u32 %v1287_v22, 16 }
  0xe5   :  { %vm1271_vm6 = vc.u32 %v1263_v39, %v1267_v12  ;;  %v1273_v9 = vadd.s32 %v1267_v12, %v1263_v39  ;;  %vm1293_vm7 = vc.u32 %v1285_v14, %v1289_v13  ;;  %v1295_v38 = vadd.s32 %v1289_v13, %v1285_v14 }
  0xe6   :  { %v552_v29 = vmul.f32 %v551_v40, %v547_v53  ;;  %v559_v6 = vmul.f32 %v558_v2, %v547_v53  ;;  %v1272_v48 = vsel %vm1271_vm6, 1, %v1860_v3  ;;  %v1294_v20 = vsel %vm1293_vm7, 1, %v1860_v3 }
  0xe7   :  { %v1274_v19 = vadd.s32 %v1272_v48, %v1266_v21  ;;  %vm1275_vm8 = vc.u32 %v1273_v9, %v1269_v1  ;;  %v1296_v26 = vadd.s32 %v1294_v20, %v1288_v57  ;;  %v1290_v16 = vshrl.u32 %v1286_v0, 16 }
  0xe8   :  { %v553_v33 = vadd.f32 1.0, %v552_v29  ;;  %v560_v44 = vadd.f32 1.0, %v559_v6  ;;  %v1276_v53 = vsel %vm1275_vm8, 1, %v1860_v3  ;;  %vm1297_vm9 = vc.u32 %v1295_v38, %v1291_v47 }
  0xe9   :  { %v1278_v4 = vadd.s32 %v1276_v53, %v1274_v19  ;;  %v602_v46 = vor.u32 %v601_v30, %v2529_v61  ;;  %v1298_v37 = vsel %vm1297_vm9, 1, %v1860_v3  ;;  %v604_v40 = vshrl.u32 %v1859_v56, %v2486_v58 }
  0xea   :  { %v561_v62 = vmul.f32 %v560_v44, %v2542_v31  ;;  %v570_v15 = vxor.u32 2147483648, %v553_v33  ;;  %v1292_v31 = vshrl.u32 %v1287_v22, 16  ;;  %v1300_v14 = vadd.s32 %v1298_v37, %v1296_v26 }
  0xeb   :  { %v1279_v2 = vadd.s32 %v1278_v4, %v1268_v32  ;;  %vm606_vm10 = vcmp.lt.s32.totalorder %v2502_v60, 1  ;;  %v2591_v21 = vadd.s32 %v1295_v38, %v1291_v47  ;;  %v605_v61 = vor.u32 %v604_v40, %v2559_v18 }
  0xec   :  { %v567_v39 = vxor.u32 2147483648, %v561_v62  ;;  %v571_v59 = vsel %vm569_vm1, %v570_v15, %v561_v62  ;;  %v1301_v1 = vadd.s32 %v1300_v14, %v1290_v16  ;;  %vm607_vm13 = vcmp.lt.s32.totalorder %v2502_v60, 2 }
  0xed   :  { %v2597_v12 = vadd.s32 %v1279_v2, %v1270_v7  ;;  %v614_v18 = vsel %vm606_vm10, %v2514_v42, %v2516_v5  ;;  %v615_v57 = vsel %vm609_vm11, %v602_v46, 920167782  ;;  %v1303_v29 = vmul.u32 %v2490_v52, %v2562_v10 }
  0xee   :  { %v568_v0 = vsel %vm566_vm2, %v553_v33, %v567_v39  ;;  %v1302_v25 = vadd.s32 %v1301_v1, %v1292_v31  ;;  %v616_v28 = vsel %vm608_vm12, %v2565_v49, %v615_v57  ;;  %v618_v6 = vsel %vm606_vm10, %v2516_v5, %v2565_v49 }
  0xef   :  { %v572_v30 = vsel %vm565_vm3, %v568_v0, %v571_v59  ;;  %vm1305_vm14 = vc.u32 %v2597_v12, %v2591_v21  ;;  %v619_v32 = vsel %vm609_vm11, %v605_v61, 1326507024  ;;  %v617_v7 = vsel %vm607_vm13, %v614_v18, %v616_v28 }
  0xf0   :  { %v573_v22 = vsel %vm562_vm4, nan, %v572_v30  ;;  %v1306_v13 = vadd.s32 1, %v1302_v25  ;;  %v620_v52 = vsel %vm608_vm12, %v602_v46, %v619_v32  ;;  %v2629_v10 = vshll.u32 %v582_v35, 8 }
  0xf1   :  { %1764 = vmatmul.msk.f32.gmra.mxu1 %vm1520_vm5, %v573_v22  ;;  %v590_v9 = vshrl.u32 %v1854_v34, %v2486_v58  ;;  %v621_v47 = vsel %vm607_vm13, %v618_v6, %v620_v52  ;;  %v647_v33 = vand.u32 65535, %v617_v7  ;;  %v648_v44 = vshrl.u32 %v617_v7, 16 }
  0xf2   :  { %v1307_v48 = vsel %vm1305_vm14, %v1306_v13, %v1302_v25  ;;  %v623_v19 = vand.u32 65535, %v2629_v10  ;;  %v624_v20 = vshrl.u32 %v2629_v10, 16  ;;  %v625_v38 = vand.u32 65535, %v621_v47 }
  0xf3   :  { %v1308_v62 = vadd.s32 %v1307_v48, %v1303_v29  ;;  %v626_v15 = vshrl.u32 %v621_v47, 16  ;;  %v611_v11 = vsel %vm609_vm11, %v2565_v49, 2102212464  ;;  %v97_v58 = vmul.f32 %v2520_v50, %v2481_v54 }
  0xf4   :  { %v629_v35 = vmul.u32 %v625_v38, %v624_v20  ;;  %v627_v26 = vmul.u32 %v625_v38, %v623_v19  ;;  %v650_v16 = vmul.u32 %v648_v44, %v623_v19  ;;  %v610_v46 = vsel %vm606_vm10, %v590_v9, %v2514_v42 }
  0xf5   :  { %v1309_v53 = vadd.s32 536870912, %v1308_v62  ;;  %v628_v4 = vmul.u32 %v626_v15, %v623_v19  ;;  %v630_v39 = vmul.u32 %v626_v15, %v624_v20  ;;  %v649_v59 = vmul.u32 %v647_v33, %v623_v19 }
  0xf6   :  { %v651_v37 = vmul.u32 %v647_v33, %v624_v20  ;;  %v633_v31 = vshll.u32 %v629_v35, 16  ;;  %v653_v49 = vshll.u32 %v650_v16, 16  ;;  %v612_v14 = vsel %vm608_vm12, %v2516_v5, %v611_v11 }
  0xf7   :  { %v2645_v40 = vshrl.u32 %v1309_v53, 30  ;;  %v631_v2 = vshll.u32 %v628_v4, 16  ;;  %v634_v0 = vshrl.u32 %v629_v35, 16  ;;  %v98_v30 = vsub.f32 1.0, %v97_v58 }
  0xf8   :  { %v655_v61 = vshll.u32 %v651_v37, 16  ;;  %v652_v42 = vmul.u32 %v648_v44, %v624_v20  ;;  %vm657_vm0 = vc.u32 %v649_v59, %v653_v49  ;;  %v659_v57 = vadd.s32 %v653_v49, %v649_v59 }
  0xf9   :  { %v1311_v1 = vshll.u32 %v2645_v40, 30  ;;  %vm635_vm15 = vc.u32 %v627_v26, %v631_v2  ;;  %v637_v22 = vadd.s32 %v631_v2, %v627_v26  ;;  %v99_v25 = vmul.f32 %v2520_v50, %v98_v30 }
  0xfa   :  { %v636_v18 = vsel %vm635_vm15, 1, %v1860_v3  ;;  %v632_v28 = vshrl.u32 %v628_v4, 16  ;;  %v654_v32 = vshrl.u32 %v650_v16, 16  ;;  %v658_v13 = vsel %vm657_vm0, 1, %v1860_v3 }
  0xfb   :  { %v1312_v29 = vsub.s32 %v1308_v62, %v1311_v1  ;;  %v638_v6 = vadd.s32 %v636_v18, %v630_v39  ;;  %vm639_vm1 = vc.u32 %v637_v22, %v633_v31  ;;  %vm661_vm2 = vc.u32 %v659_v57, %v655_v61 }
  0xfc   :  { %v640_v5 = vsel %vm639_vm1, 1, %v1860_v3  ;;  %v660_v9 = vadd.s32 %v658_v13, %v652_v42  ;;  %v656_v47 = vshrl.u32 %v651_v37, 16  ;;  %v662_v33 = vsel %vm661_vm2, 1, %v1860_v3 }
  0xfd   :  { %vm1313_vm3 = vcmp.lt.s32.totalorder %v1312_v29, 0  ;;  %v1314_v7 = vsub.s32 0, %v1312_v29  ;;  %v642_v52 = vadd.s32 %v640_v5, %v638_v6  ;;  %v100_v44 = vadd.f32 %v2520_v50, %v99_v25 }
  0xfe   :  { %vm101_vm4 = vweird.f32 %v2481_v54  ;;  %v664_v20 = vadd.s32 %v662_v33, %v660_v9  ;;  %vm102_vm6 = vweird.f32 %v2520_v50  ;;  %v2659_v62 = vadd.s32 %v659_v57, %v655_v61 }
  0xff   :  { %v1315_v48 = vsel %vm1313_vm3, %v1314_v7, %v1312_v29  ;;  %v643_v19 = vadd.s32 %v642_v52, %v632_v28  ;;  %vm2661_vm7 = vmor %vm101_vm4, %vm102_vm6  ;;  %v105_v11 = vand.u32 2147483647, %v2481_v54  ;;  %v107_v35 = vand.u32 2147483648, %v2481_v54 }
 0x100   :  { %v1316_v38 = vclz %v1315_v48  ;;  %v613_v58 = vsel %vm607_vm13, %v610_v46, %v612_v14  ;;  %v665_v26 = vadd.s32 %v664_v20, %v654_v32  ;;  %v104_v4 = vsel %vm2661_vm7, %v2520_v50, %v100_v44 }
 0x101   :  { %v2669_v53 = vadd.s32 %v643_v19, %v634_v0  ;;  %vm106_vm8 = vcmp.eq.f32.partialorder %v105_v11, 8.507059e+37  ;;  %v108_v39 = vor.u32 1.1754944e-38, %v107_v35  ;;  %v1304_v59 = vadd.s32 %v2591_v21, %v2597_v12 }
 0x102   :  { %v1754_v16 = vadd.s32 4294967294, %v1316_v38  ;;  %v666_v37 = vadd.s32 %v665_v26, %v656_v47  ;;  %v667_v54 = vmul.u32 %v2629_v10, %v613_v58  ;;  %v1334_v10 = vsub.s32 4, %v2645_v40 }
 0x103   :  { %vm669_vm10 = vc.u32 %v2669_v53, %v2659_v62  ;;  %v109_v60 = vsel %vm106_vm8, %v108_v39, %v104_v4  ;;  %vm1212_vm11 = vcmp.lt.s32.totalorder %v2461_v8, 0  ;;  %vm2698_vm12 = vcmp.le.f32.partialorder %v1210_v55, 0.7853982 }
 0x104   :  { %vm1755_vm9 = vcmp.lt.s32.totalorder %v1754_v16, 0  ;;  %v670_v2 = vadd.s32 1, %v666_v37  ;;  %v887_v31 = vmul.f32 %v2433_v23, %v109_v60  ;;  %v258_v0 = vmul.f32 %v2430_v24, %v109_v60 }
 0x105   :  { %v1319_v46 = vsel %vm1755_vm9, 0, %v1754_v16  ;;  %vm576_vm14 = vcmp.lt.s32.totalorder %v2441_v27, 0  ;;  %vm2720_vm15 = vcmp.le.f32.partialorder %v574_v51, 0.7853982  ;;  %v668_v60 = vadd.s32 %v2659_v62, %v2669_v53 }
 0x106   :  { %v1320_v49 = vsub.s32 32, %v1319_v46  ;;  %v1321_v50 = vshll.u32 %v1312_v29, %v1319_v46  ;;  %v1324_v14 = vsub.s32 4294967266, %v1319_v46  ;;  %v671_v61 = vsel %vm669_vm10, %v670_v2, %v666_v37 }
 0x107   :  { %v672_v12 = vadd.s32 %v671_v61, %v667_v54  ;;  %v891_v1 = vadd.f32 %v887_v31, %v2451_v17  ;;  %v2684_v22 = vadd.f32 %v2438_v63, %v258_v0  ;;  %v1335_v17 = vsel %vm1212_vm11, %v1334_v10, %v2645_v40 }
 0x108   :  { %v1322_v30 = vshrl.u32 %v1304_v59, %v1320_v49  ;;  %v1325_v21 = vadd.s32 127, %v1324_v14  ;;  %v1337_v33 = vsel %vm2698_vm12, 0, %v1335_v17  ;;  %vm1353_vm7 = vweird.f32 %v2461_v8 }
 0x109   :  { %v673_v57 = vadd.s32 536870912, %v672_v12  ;;  %v895_v23 = vmul.f32 %v2430_v24, %v891_v1  ;;  %v732_v25 = vand.u32 2139095040, %v2684_v22  ;;  %v1354_v55 = vadd.s32 3, %v1337_v33 }
 0x10a   :  { %v1323_v42 = vor.u32 %v1322_v30, %v1321_v50  ;;  %v1326_v18 = vshll.u32 %v1325_v21, 23  ;;  %v729_v59 = vand.u32 2147483647, %v2684_v22 }
 0x10b   :  { %v674_v6 = vshrl.u32 %v673_v57, 30  ;;  %v2690_v5 = vadd.f32 %v2438_v63, %v895_v23  ;;  %v733_v32 = vshrl.u32 %v732_v25, 23  ;;  %v2728_v2 = vand.u32 3, %v1354_v55 }
 0x10c   :  { %v1327_v29 = vor.u32 4788187, %v1326_v18  ;;  %v1330_v28 = vcvt.s32.f32 %v1323_v42  ;;  %v2736_v62 = vand.u32 8388607, %v729_v59 }
 0x10d   :  { %v675_v7 = vshll.u32 %v674_v6, 30  ;;  %v1365_v52 = vand.u32 2147483647, %v2690_v5  ;;  %v1368_v9 = vand.u32 2139095040, %v2690_v5  ;;  %v1744_v47 = vadd.s32 4294967169, %v733_v32 }
 0x10e   :  { %v1328_v13 = vand.u32 2147483647, %v1327_v29  ;;  %v698_v38 = vsub.s32 4, %v674_v6  ;;  %vm1360_vm3 = vcmp.eq.s32.totalorder %v2728_v2, 2  ;;  %vm1357_vm4 = vcmp.eq.s32.totalorder %v2728_v2, 0 }
 0x10f   :  { %v676_v44 = vsub.s32 %v672_v12, %v675_v7  ;;  %v1372_v40 = vand.u32 8388607, %v1365_v52  ;;  %v1369_v48 = vshrl.u32 %v1368_v9, 23  ;;  %v739_v11 = vadd.s32 1, %v1744_v47 }
 0x110   :  { %v1331_v63 = vmul.f32 %v1330_v28, %v1328_v13  ;;  %v699_v46 = vsel %vm576_vm14, %v698_v38, %v674_v6  ;;  %vm1356_vm6 = vcmp.lt.s32.totalorder %v2728_v2, 2 }
 0x111   :  { %vm677_vm13 = vcmp.lt.s32.totalorder %v676_v44, 0  ;;  %v678_v20 = vsub.s32 0, %v676_v44  ;;  %v1756_v15 = vadd.s32 4294967169, %v1369_v48  ;;  %v1373_v26 = vor.u32 8388608, %v1372_v40 }
 0x112   :  { %v1332_v19 = vxor.u32 2147483648, %v1331_v63  ;;  %vm740_vm1 = vcmp.gt.s32.totalorder %v739_v11, 0  ;;  %v701_v51 = vsel %vm2720_vm15, 0, %v699_v46 }
 0x113   :  { %v679_v58 = vsel %vm677_vm13, %v678_v20, %v676_v44  ;;  %v1375_v39 = vadd.s32 1, %v1756_v15  ;;  %v2730_v0 = vshll.u32 %v1373_v26, 8  ;;  %v2738_v12 = vsel %vm740_vm1, %v739_v11, 0 }
 0x114   :  { %v1333_v35 = vsel %vm1212_vm11, %v1332_v19, %v1331_v63  ;;  %v680_v16 = vclz %v679_v58  ;;  %v718_v17 = vadd.s32 3, %v701_v51  ;;  %v2749_v32 = vand.u32 31, %v2738_v12 }
 0x115   :  { %v2713_v4 = vsel %vm2698_vm12, %v2461_v8, %v1333_v35  ;;  %vm1376_vm0 = vcmp.gt.s32.totalorder %v1375_v39, 0  ;;  %v2742_v25 = vand.u32 65535, %v2730_v0  ;;  %v2745_v29 = vshrl.u32 %v2730_v0, 16 }
 0x116   :  { %v1338_v37 = vmul.f32 %v2713_v4, %v2713_v4  ;;  %v1742_v31 = vadd.s32 4294967294, %v680_v16  ;;  %v1377_v14 = vsel %vm1376_vm0, %v1375_v39, 0 }
 0x117   :  { %v1379_v61 = vand.u32 31, %v1377_v14  ;;  %v1378_v19 = vshrl.u32 %v1377_v14, 5 }
 0x118   :  { %v1339_v49 = vmul.f32 -0.001358992, %v1338_v37  ;;  %v1346_v50 = vmul.f32 -0.00019511016, %v1338_v37  ;;  %vm1743_vm2 = vcmp.lt.s32.totalorder %v1742_v31, 0 }
 0x119   :  { %v683_v21 = vsel %vm1743_vm2, 0, %v1742_v31  ;;  %v1380_v18 = vsub.s32 32, %v1379_v61  ;;  %v1382_v24 = vshll.u32 %v1854_v34, %v1379_v61  ;;  %v1385_v33 = vshll.u32 %v1855_v36, %v1379_v61 }
 0x11a   :  { %v1340_v53 = vadd.f32 0.041655596, %v1339_v49  ;;  %v1347_v30 = vadd.f32 0.008332121, %v1346_v50  ;;  %v684_v1 = vsub.s32 32, %v683_v21  ;;  %v685_v10 = vshll.u32 %v676_v44, %v683_v21 }
 0x11b   :  { %v688_v42 = vsub.s32 4294967266, %v683_v21  ;;  %v1383_v9 = vshrl.u32 %v1855_v36, %v1380_v18  ;;  %v1386_v44 = vshrl.u32 %v1856_v41, %v1380_v18  ;;  %v1381_v20 = vshrl.u32 %v1854_v34, %v1380_v18 }
 0x11c   :  { %v1341_v57 = vmul.f32 %v1340_v53, %v1338_v37  ;;  %v1348_v23 = vmul.f32 %v1347_v30, %v1338_v37  ;;  %v686_v28 = vshrl.u32 %v668_v60, %v684_v1  ;;  %v1388_v26 = vshll.u32 %v1856_v41, %v1379_v61 }
 0x11d   :  { %v689_v6 = vadd.s32 127, %v688_v42  ;;  %v1384_v15 = vor.u32 %v1383_v9, %v1382_v24  ;;  %v1387_v11 = vor.u32 %v1386_v44, %v1385_v33  ;;  %v1389_v16 = vshrl.u32 %v1857_v43, %v1380_v18 }
 0x11e   :  { %v1342_v13 = vadd.f32 -0.4999988, %v1341_v57  ;;  %v1349_v7 = vadd.f32 -0.16666654, %v1348_v23  ;;  %v687_v47 = vor.u32 %v686_v28, %v685_v10  ;;  %v1391_v60 = vshll.u32 %v1857_v43, %v1379_v61 }
 0x11f   :  { %v690_v63 = vshll.u32 %v689_v6, 23  ;;  %v1392_v46 = vshrl.u32 %v1858_v45, %v1380_v18  ;;  %v1390_v50 = vor.u32 %v1389_v16, %v1388_v26  ;;  %v1395_v14 = vshrl.u32 %v1859_v56, %v1380_v18 }
 0x120   :  { %v1343_v40 = vmul.f32 %v1342_v13, %v1338_v37  ;;  %v1350_v48 = vmul.f32 %v1349_v7, %v1338_v37  ;;  %v694_v55 = vcvt.s32.f32 %v687_v47  ;;  %v1394_v37 = vshll.u32 %v1858_v45, %v1379_v61 }
 0x121   :  { %v691_v38 = vor.u32 4788187, %v690_v63  ;;  %v1393_v53 = vor.u32 %v1392_v46, %v1391_v60  ;;  %vm1397_vm8 = vcmp.lt.s32.totalorder %v1378_v19, 1  ;;  %vm1398_vm9 = vcmp.lt.s32.totalorder %v1378_v19, 2 }
 0x122   :  { %v1344_v35 = vadd.f32 1.0, %v1343_v40  ;;  %v1351_v58 = vadd.f32 1.0, %v1350_v48  ;;  %v1396_v1 = vor.u32 %v1395_v14, %v1394_v37  ;;  %vm1399_vm10 = vcmp.lt.s32.totalorder %v1378_v19, 3 }
 0x123   :  { %v692_v39 = vand.u32 2147483647, %v691_v38  ;;  %vm1400_vm11 = vcmp.lt.s32.totalorder %v1378_v19, 4  ;;  %v1401_v42 = vsel %vm1397_vm8, %v1381_v20, %v1384_v15  ;;  %v1405_v61 = vsel %vm1397_vm8, %v1384_v15, %v1387_v11 }
 0x124   :  { %v1352_v31 = vmul.f32 %v1351_v58, %v2713_v4  ;;  %v1361_v49 = vxor.u32 2147483648, %v1344_v35  ;;  %v1402_v57 = vsel %vm1400_vm11, %v1390_v50, 2102212464  ;;  %v1406_v18 = vsel %vm1400_vm11, %v1393_v53, 920167782 }
 0x125   :  { %v695_v51 = vmul.f32 %v694_v55, %v692_v39  ;;  %v1409_v23 = vsel %vm1397_vm8, %v1387_v11, %v1390_v50  ;;  %v1403_v13 = vsel %vm1399_vm10, %v1387_v11, %v1402_v57  ;;  %v1407_v7 = vsel %vm1399_vm10, %v1390_v50, %v1406_v18 }
 0x126   :  { %v1358_v30 = vxor.u32 2147483648, %v1352_v31  ;;  %v1362_v21 = vsel %vm1360_vm3, %v1361_v49, %v1352_v31  ;;  %v2785_v47 = vsel %vm1398_vm9, %v1401_v42, %v1403_v13  ;;  %v1408_v2 = vsel %vm1398_vm9, %v1405_v61, %v1407_v7 }
 0x127   :  { %v696_v10 = vxor.u32 2147483648, %v695_v51  ;;  %v1410_v33 = vsel %vm1400_vm11, %v1396_v1, 1326507024  ;;  %v1438_v44 = vand.u32 65535, %v1408_v2  ;;  %v1439_v8 = vshrl.u32 %v1408_v2, 16 }
 0x128   :  { %v1359_v4 = vsel %vm1357_vm4, %v1344_v35, %v1358_v30  ;;  %v2792_v40 = vand.u32 3, %v718_v17  ;;  %v1411_v54 = vsel %vm1399_vm10, %v1393_v53, %v1410_v33  ;;  %v737_v48 = vor.u32 8388608, %v2736_v62 }
 0x129   :  { %v1363_v28 = vsel %vm1356_vm6, %v1359_v4, %v1362_v21  ;;  %v697_v6 = vsel %vm576_vm14, %v696_v10, %v695_v51  ;;  %v2797_v20 = vshrl.u32 %v2738_v12, 5  ;;  %v1412_v15 = vsel %vm1398_vm9, %v1409_v23, %v1411_v54 }
 0x12a   :  { %v1364_v24 = vsel %vm1353_vm7, nan, %v1363_v28  ;;  %v2782_v9 = vsel %vm2720_vm15, %v2441_v27, %v697_v6  ;;  %v1458_v11 = vmul.u32 %v2730_v0, %v2785_v47  ;;  %v1416_v35 = vand.u32 65535, %v1412_v15 }
 0x12b   :  { %1761 = vmatmul.msk.f32.gmra.mxu0 %vm1520_vm5, %v1364_v24  ;;  %v702_v63 = vmul.f32 %v2782_v9, %v2782_v9  ;;  %v1417_v58 = vshrl.u32 %v1412_v15, 16  ;;  %v1441_v26 = vmul.u32 %v1439_v8, %v2742_v25  ;;  %v2804_v17 = vsub.s32 32, %v2749_v32 }
 0x12c   :  { %v1442_v60 = vmul.u32 %v1438_v44, %v2745_v29  ;;  %v746_v12 = vshll.u32 %v1854_v34, %v2749_v32  ;;  %vm724_vm12 = vcmp.eq.s32.totalorder %v2792_v40, 2  ;;  %v1418_v19 = vmul.u32 %v1416_v35, %v2742_v25 }
 0x12d   :  { %v703_v38 = vmul.f32 -0.001358992, %v702_v63  ;;  %v710_v55 = vmul.f32 -0.00019511016, %v702_v63  ;;  %v1419_v46 = vmul.u32 %v1417_v58, %v2742_v25  ;;  %v1420_v37 = vmul.u32 %v1416_v35, %v2745_v29 }
 0x12e   :  { %v1440_v31 = vmul.u32 %v1438_v44, %v2742_v25  ;;  %v1443_v14 = vmul.u32 %v1439_v8, %v2745_v29  ;;  %v1444_v51 = vshll.u32 %v1441_v26, 16  ;;  %vm721_vm13 = vcmp.eq.s32.totalorder %v2792_v40, 0 }
 0x12f   :  { %v704_v16 = vadd.f32 0.041655596, %v703_v38  ;;  %v711_v39 = vadd.f32 0.008332121, %v710_v55  ;;  %v1421_v53 = vmul.u32 %v1417_v58, %v2745_v29  ;;  %v1422_v30 = vshll.u32 %v1419_v46, 16 }
 0x130   :  { %v1424_v21 = vshll.u32 %v1420_v37, 16  ;;  %v1445_v1 = vshrl.u32 %v1441_v26, 16  ;;  %vm720_vm14 = vcmp.lt.s32.totalorder %v2792_v40, 2  ;;  %v1423_v61 = vshrl.u32 %v1419_v46, 16 }
 0x131   :  { %v705_v49 = vmul.f32 %v704_v16, %v702_v63  ;;  %v712_v50 = vmul.f32 %v711_v39, %v702_v63  ;;  %v1446_v4 = vshll.u32 %v1442_v60, 16  ;;  %vm717_vm15 = vweird.f32 %v2441_v27 }
 0x132   :  { %vm1426_vm0 = vc.u32 %v1418_v19, %v1422_v30  ;;  %v1428_v25 = vadd.s32 %v1422_v30, %v1418_v19  ;;  %vm1448_vm1 = vc.u32 %v1440_v31, %v1444_v51  ;;  %v1450_v57 = vadd.s32 %v1444_v51, %v1440_v31 }
 0x133   :  { %v706_v10 = vadd.f32 -0.4999988, %v705_v49  ;;  %v713_v42 = vadd.f32 -0.16666654, %v712_v50  ;;  %v1427_v28 = vsel %vm1426_vm0, 1, %v1860_v3  ;;  %v1449_v29 = vsel %vm1448_vm1, 1, %v1860_v3 }
 0x134   :  { %v1429_v6 = vadd.s32 %v1427_v28, %v1421_v53  ;;  %vm1430_vm2 = vc.u32 %v1428_v25, %v1424_v21  ;;  %v1451_v13 = vadd.s32 %v1449_v29, %v1443_v14  ;;  %vm1452_vm3 = vc.u32 %v1450_v57, %v1446_v4 }
 0x135   :  { %v707_v18 = vmul.f32 %v706_v10, %v702_v63  ;;  %v714_v23 = vmul.f32 %v713_v42, %v702_v63  ;;  %v1431_v2 = vsel %vm1430_vm2, 1, %v1860_v3  ;;  %v1453_v33 = vsel %vm1452_vm3, 1, %v1860_v3 }
 0x136   :  { %v1425_v44 = vshrl.u32 %v1420_v37, 16  ;;  %v1433_v8 = vadd.s32 %v1431_v2, %v1429_v6  ;;  %v1447_v54 = vshrl.u32 %v1442_v60, 16  ;;  %v1455_v38 = vadd.s32 %v1453_v33, %v1451_v13 }
 0x137   :  { %v708_v7 = vadd.f32 1.0, %v707_v18  ;;  %v715_v24 = vadd.f32 1.0, %v714_v23  ;;  %v2824_v15 = vadd.s32 %v1450_v57, %v1446_v4  ;;  %v747_v35 = vshrl.u32 %v1855_v36, %v2804_v17 }
 0x138   :  { %v1434_v58 = vadd.s32 %v1433_v8, %v1423_v61  ;;  %v1456_v26 = vadd.s32 %v1455_v38, %v1445_v1  ;;  %v749_v16 = vshll.u32 %v1855_v36, %v2749_v32  ;;  %v750_v39 = vshrl.u32 %v1856_v41, %v2804_v17 }
 0x139   :  { %v716_v63 = vmul.f32 %v715_v24, %v2782_v9  ;;  %v725_v55 = vxor.u32 2147483648, %v708_v7  ;;  %v752_v9 = vshll.u32 %v1856_v41, %v2749_v32  ;;  %v753_v46 = vshrl.u32 %v1857_v43, %v2804_v17 }
 0x13a   :  { %v2838_v37 = vadd.s32 %v1434_v58, %v1425_v44  ;;  %v1457_v31 = vadd.s32 %v1456_v26, %v1447_v54  ;;  %v755_v49 = vshll.u32 %v1857_v43, %v2749_v32  ;;  %v756_v36 = vshrl.u32 %v1858_v45, %v2804_v17 }
 0x13b   :  { %v722_v19 = vxor.u32 2147483648, %v716_v63  ;;  %v726_v60 = vsel %vm724_vm12, %v725_v55, %v716_v63  ;;  %v748_v14 = vor.u32 %v747_v35, %v746_v12  ;;  %v758_v51 = vshll.u32 %v1858_v45, %v2749_v32 }
 0x13c   :  { %v759_v41 = vshrl.u32 %v1859_v56, %v2804_v17  ;;  %vm1460_vm4 = vc.u32 %v2838_v37, %v2824_v15  ;;  %v1461_v43 = vadd.s32 1, %v1457_v31  ;;  %v751_v30 = vor.u32 %v750_v39, %v749_v16 }
 0x13d   :  { %v723_v50 = vsel %vm721_vm13, %v708_v7, %v722_v19  ;;  %v754_v1 = vor.u32 %v753_v46, %v752_v9  ;;  %v757_v10 = vor.u32 %v756_v36, %v755_v49  ;;  %vm761_vm6 = vcmp.lt.s32.totalorder %v2797_v20, 1 }
 0x13e   :  { %v727_v53 = vsel %vm720_vm14, %v723_v50, %v726_v60  ;;  %v1462_v45 = vsel %vm1460_vm4, %v1461_v43, %v1457_v31  ;;  %v760_v32 = vor.u32 %v759_v41, %v758_v51  ;;  %vm763_vm7 = vcmp.lt.s32.totalorder %v2797_v20, 3 }
 0x13f   :  { %v728_v21 = vsel %vm717_vm15, nan, %v727_v53  ;;  %vm764_vm8 = vcmp.lt.s32.totalorder %v2797_v20, 4  ;;  %v1463_v56 = vadd.s32 %v1462_v45, %v1458_v11  ;;  %vm762_vm9 = vcmp.lt.s32.totalorder %v2797_v20, 2 }
 0x140   :  { %1765 = vmatmul.msk.f32.gmra.mxu1 %vm1520_vm5, %v728_v21  ;;  %v769_v27 = vsel %vm761_vm6, %v748_v14, %v751_v30  ;;  %v770_v40 = vsel %vm764_vm8, %v757_v10, 920167782  ;;  %v773_v61 = vsel %vm761_vm6, %v751_v30, %v754_v1  ;;  %v774_v0 = vsel %vm764_vm8, %v760_v32, 1326507024 }
 0x141   :  { %v1464_v12 = vadd.s32 536870912, %v1463_v56  ;;  %v771_v42 = vsel %vm763_vm7, %v754_v1, %v770_v40  ;;  %v2878_v47 = vshll.u32 %v737_v48, 8  ;;  %v775_v25 = vsel %vm763_vm7, %v757_v10, %v774_v0 }
 0x142   :  { %v772_v4 = vsel %vm762_vm9, %v769_v27, %v771_v42  ;;  %v745_v23 = vshrl.u32 %v1854_v34, %v2804_v17  ;;  %v776_v28 = vsel %vm762_vm9, %v773_v61, %v775_v25  ;;  %v766_v33 = vsel %vm764_vm8, %v754_v1, 2102212464 }
 0x143   :  { %v2880_v11 = vshrl.u32 %v1464_v12, 30  ;;  %v802_v57 = vand.u32 65535, %v772_v4  ;;  %v803_v18 = vshrl.u32 %v772_v4, 16  ;;  %v778_v29 = vand.u32 65535, %v2878_v47 }
 0x144   :  { %v779_v6 = vshrl.u32 %v2878_v47, 16  ;;  %v780_v48 = vand.u32 65535, %v776_v28  ;;  %v781_v13 = vshrl.u32 %v776_v28, 16  ;;  %v765_v34 = vsel %vm761_vm6, %v745_v23, %v748_v14 }
 0x145   :  { %v1466_v62 = vshll.u32 %v2880_v11, 30  ;;  %v805_v7 = vmul.u32 %v803_v18, %v778_v29  ;;  %v804_v54 = vmul.u32 %v802_v57, %v778_v29  ;;  %v767_v58 = vsel %vm763_vm7, %v751_v30, %v766_v33 }
 0x146   :  { %v806_v24 = vmul.u32 %v802_v57, %v779_v6  ;;  %v782_v44 = vmul.u32 %v780_v48, %v778_v29  ;;  %v783_v8 = vmul.u32 %v781_v13, %v778_v29  ;;  %v784_v17 = vmul.u32 %v780_v48, %v779_v6 }
 0x147   :  { %v1467_v2 = vsub.s32 %v1463_v56, %v1466_v62  ;;  %v808_v38 = vshll.u32 %v805_v7, 16  ;;  %v785_v55 = vmul.u32 %v781_v13, %v779_v6  ;;  %v807_v16 = vmul.u32 %v803_v18, %v779_v6 }
 0x148   :  { %v786_v35 = vshll.u32 %v783_v8, 16  ;;  %v788_v26 = vshll.u32 %v784_v17, 16  ;;  %v810_v39 = vshll.u32 %v806_v24, 16  ;;  %v787_v60 = vshrl.u32 %v783_v8, 16 }
 0x149   :  { %vm1468_vm10 = vcmp.lt.s32.totalorder %v1467_v2, 0  ;;  %v1469_v63 = vsub.s32 0, %v1467_v2  ;;  %vm812_vm12 = vc.u32 %v804_v54, %v808_v38  ;;  %v814_v49 = vadd.s32 %v808_v38, %v804_v54 }
 0x14a   :  { %vm790_vm11 = vc.u32 %v782_v44, %v786_v35  ;;  %v792_v9 = vadd.s32 %v786_v35, %v782_v44  ;;  %v809_v50 = vshrl.u32 %v805_v7, 16  ;;  %v813_v14 = vsel %vm812_vm12, 1, %v1860_v3 }
 0x14b   :  { %v1470_v19 = vsel %vm1468_vm10, %v1469_v63, %v1467_v2  ;;  %v791_v31 = vsel %vm790_vm11, 1, %v1860_v3  ;;  %v815_v53 = vadd.s32 %v813_v14, %v807_v16  ;;  %vm816_vm14 = vc.u32 %v814_v49, %v810_v39 }
 0x14c   :  { %v1471_v46 = vclz %v1470_v19  ;;  %v793_v36 = vadd.s32 %v791_v31, %v785_v55  ;;  %vm794_vm13 = vc.u32 %v792_v9, %v788_v26  ;;  %v789_v43 = vshrl.u32 %v784_v17, 16 }
 0x14d   :  { %v795_v41 = vsel %vm794_vm13, 1, %v1860_v3  ;;  %v817_v21 = vsel %vm816_vm14, 1, %v1860_v3  ;;  %v1459_v1 = vadd.s32 %v2824_v15, %v2838_v37  ;;  %v811_v10 = vshrl.u32 %v806_v24, 16 }
 0x14e   :  { %v1757_v51 = vadd.s32 4294967294, %v1471_v46  ;;  %v797_v30 = vadd.s32 %v795_v41, %v793_v36  ;;  %v819_v45 = vadd.s32 %v817_v21, %v815_v53  ;;  %v768_v56 = vsel %vm762_vm9, %v765_v34, %v767_v58 }
 0x14f   :  { %v818_v40 = vadd.s32 %v814_v49, %v810_v39  ;;  %v822_v18 = vmul.u32 %v2878_v47, %v768_v56  ;;  %vm1367_vm1 = vcmp.lt.s32.totalorder %v2690_v5, 0  ;;  %v1489_v7 = vsub.s32 4, %v2880_v11 }
 0x150   :  { %vm1758_vm15 = vcmp.lt.s32.totalorder %v1757_v51, 0  ;;  %v798_v27 = vadd.s32 %v797_v30, %v787_v60  ;;  %v820_v4 = vadd.s32 %v819_v45, %v809_v50  ;;  %vm2912_vm2 = vcmp.le.f32.partialorder %v1365_v52, 0.7853982 }
 0x151   :  { %v1474_v32 = vsel %vm1758_vm15, 0, %v1757_v51  ;;  %v1490_v8 = vsel %vm1367_vm1, %v1489_v7, %v2880_v11  ;;  %vm1508_vm9 = vweird.f32 %v2690_v5  ;;  %vm731_vm10 = vcmp.lt.s32.totalorder %v2684_v22, 0  ;;  %v129_v7 = vld [vmem:[%s3021_s2 + $0x50] sm:$0xff] }
 0x152   :  { %v1475_v12 = vsub.s32 32, %v1474_v32  ;;  %v1476_v42 = vshll.u32 %v1467_v2, %v1474_v32  ;;  %v1479_v61 = vsub.s32 4294967266, %v1474_v32  ;;  %v799_v0 = vadd.s32 %v798_v27, %v789_v43 }
 0x153   :  { %v821_v3 = vadd.s32 %v820_v4, %v811_v10  ;;  %v1492_v52 = vsel %vm2912_vm2, 0, %v1490_v8  ;;  %v1591_v4 = vpop.f32.mrf.mxu1  ;;  %vm2949_vm11 = vcmp.le.f32.partialorder %v729_v59, 0.7853982  ;;  %v128_v8 = vld [vmem:[%s3021_s2 + $0x48] sm:$0xff]  ;;  %vm1613_vm12 = vcmask 523264  }
 0x154   :  { %v1477_v25 = vshrl.u32 %v1459_v1, %v1475_v12  ;;  %v1480_v57 = vadd.s32 127, %v1479_v61  ;;  %vm824_vm0 = vc.u32 %v799_v0, %v818_v40  ;;  %v1509_v39 = vadd.s32 3, %v1492_v52  ;;  %v134_v12 = vld [vmem:[%s3021_s2 + $0x78] sm:$0xff]  ;;  %v1550_v61 = vpop.f32.mrf.mxu0 }
 0x155   :  { %v825_v23 = vadd.s32 1, %v821_v3  ;;  %v823_v31 = vadd.s32 %v818_v40, %v799_v0  ;;  %1634 = vmatpush.msra.mxu2 %v134_v12  ;;  %v114_v12 = vld [vmem:[%s3020_s1 + $0x40] sm:$0xff] }
 0x156   :  { %v1478_v15 = vor.u32 %v1477_v25, %v1476_v42  ;;  %v1481_v37 = vshll.u32 %v1480_v57, 23  ;;  %v1510_v49 = vand.u32 3, %v1509_v39  ;;  %v133_v42 = vld [vmem:[%s3021_s2 + $0x70] sm:$0xff] }
 0x157   :  { %v826_v20 = vsel %vm824_vm0, %v825_v23, %v821_v3  ;;  %v132_v3 = vld [vmem:[%s3021_s2 + $0x68] sm:$0xff]  ;;  %1635 = vmatpush.msra.mxu2 %v133_v42  ;;  %v131_v23 = vld [vmem:[%s3021_s2 + $0x60] sm:$0xff]  ;;  %vm872_vm0 = vweird.f32 %v2684_v22  ;;  %v113_v42 = vld [vmem:[%s3020_s1 + $0x38] sm:$0xff] }
 0x158   :  { %v1482_v28 = vor.u32 4788187, %v1481_v37  ;;  %v1485_v29 = vcvt.s32.f32 %v1478_v15  ;;  %v827_v6 = vadd.s32 %v826_v20, %v822_v18  ;;  %vm1515_vm6 = vcmp.eq.s32.totalorder %v1510_v49, 2 }
 0x159   :  { %vm1512_vm7 = vcmp.eq.s32.totalorder %v1510_v49, 0  ;;  %vm1511_vm8 = vcmp.lt.s32.totalorder %v1510_v49, 2  ;;  %1636 = vmatpush.msra.mxu2 %v132_v3 }
 0x15a   :  { %v1483_v62 = vand.u32 2147483647, %v1482_v28  ;;  %v828_v48 = vadd.s32 536870912, %v827_v6  ;;  %v1592_v28 = vadd.f32 %v1591_v4, %v1550_v61  ;;  %v112_v61 = vld [vmem:[%s3020_s1 + $0x30] sm:$0xff]  ;;  %v1789_v4 = vld [vmem:[%s3021_s2 + $0x81] ss:$0 sm:$0xff] }
 0x15b   :  { %1637 = vmatpush.msra.mxu2 %v131_v23 }
 0x15c   :  { %v1486_v13 = vmul.f32 %v1485_v29, %v1483_v62  ;;  %v2908_v24 = vshrl.u32 %v828_v48, 30 }
 0x15e   :  { %v1487_v2 = vxor.u32 2147483648, %v1486_v13  ;;  %v830_v33 = vshll.u32 %v2908_v24, 30  ;;  %v853_v20 = vsub.s32 4, %v2908_v24 }
 0x160   :  { %v1488_v44 = vsel %vm1367_vm1, %v1487_v2, %v1486_v13  ;;  %v831_v17 = vsub.s32 %v827_v6, %v830_v33  ;;  %v130_v6 = vld [vmem:[%s3021_s2 + $0x58] sm:$0xff]  ;;  %v1553_v2 = vpop.f32.mrf.mxu0 }
 0x161   :  { %v1491_v34 = vsel %vm2912_vm2, %v2690_v5, %v1488_v44  ;;  %v2939_v5 = vld [vmem:[%s3021_s2 + $0x80] ss:$0 sm:$0xff]  ;;  %1638 = vmatpush.msra.mxu2 %v130_v6  ;;  %v854_v44 = vsel %vm731_vm10, %v853_v20, %v2908_v24 }
 0x162   :  { %v1493_v54 = vmul.f32 %v1491_v34, %v1491_v34  ;;  %vm832_vm3 = vcmp.lt.s32.totalorder %v831_v17, 0  ;;  %v833_v38 = vsub.s32 0, %v831_v17  ;;  %v1604_v13 = vadd.f32 %v2939_v5, %v1592_v28 }
 0x163   :  { %1639 = vmatpush.msra.mxu2 %v129_v7  ;;  %v856_v52 = vsel %vm2949_vm11, 0, %v854_v44  ;;  %v1790_v7 = vld [vmem:[%s3020_s1 + $0x2] ss:$0 sm:$0xff] }
 0x164   :  { %v1494_v63 = vmul.f32 -0.001358992, %v1493_v54  ;;  %v1501_v55 = vmul.f32 -0.00019511016, %v1493_v54  ;;  %v834_v35 = vsel %vm832_vm3, %v833_v38, %v831_v17 }
 0x165   :  { %v835_v16 = vclz %v834_v35  ;;  %1640 = vmatpush.msra.mxu2 %v128_v8 }
 0x166   :  { %v1495_v58 = vadd.f32 0.041655596, %v1494_v63  ;;  %v1502_v26 = vadd.f32 0.008332121, %v1501_v55 }
 0x167   :  { %v1745_v60 = vadd.s32 4294967294, %v835_v16 }
 0x168   :  { %v1496_v19 = vmul.f32 %v1495_v58, %v1493_v54  ;;  %v1503_v11 = vmul.f32 %v1502_v26, %v1493_v54  ;;  %v873_v58 = vadd.s32 3, %v856_v52 }
 0x169   :  { %vm1746_vm4 = vcmp.lt.s32.totalorder %v1745_v60, 0 }
 0x16a   :  { %v1497_v9 = vadd.f32 -0.4999988, %v1496_v19  ;;  %v1504_v46 = vadd.f32 -0.16666654, %v1503_v11  ;;  %v838_v36 = vsel %vm1746_vm4, 0, %v1745_v60  ;;  %v874_v60 = vand.u32 3, %v873_v58 }
 0x16b   :  { %v839_v51 = vsub.s32 32, %v838_v36  ;;  %v840_v41 = vshll.u32 %v831_v17, %v838_v36  ;;  %v843_v53 = vsub.s32 4294967266, %v838_v36  ;;  %v1608_v17 = vmax.f32 %v1604_v13, 0.0 }
 0x16c   :  { %v1498_v50 = vmul.f32 %v1497_v9, %v1493_v54  ;;  %v1505_v14 = vmul.f32 %v1504_v46, %v1493_v54  ;;  %v127_v54 = vld [vmem:[%s3021_s2 + $0x40] sm:$0xff]  ;;  %vm879_vm13 = vcmp.eq.s32.totalorder %v874_v60, 2  ;;  %vm876_vm14 = vcmp.eq.s32.totalorder %v874_v60, 0 }
 0x16d   :  { %v841_v21 = vshrl.u32 %v823_v31, %v839_v51  ;;  %v844_v1 = vadd.s32 127, %v843_v53  ;;  %1641 = vmatpush.msra.mxu2 %v127_v54  ;;  %vm875_vm15 = vcmp.lt.s32.totalorder %v874_v60, 2 }
 0x16e   :  { %v1499_v43 = vadd.f32 1.0, %v1498_v50  ;;  %v1506_v30 = vadd.f32 1.0, %v1505_v14  ;;  %v1594_v33 = vpop.f32.mrf.mxu1  ;;  %1767 = vmatmul.msk.f32.vlgmr.msra.gmra.mxu2 %vm1613_vm12, %v1608_v17 }
 0x16f   :  { %v842_v32 = vor.u32 %v841_v21, %v840_v41  ;;  %v845_v56 = vshll.u32 %v844_v1, 23  ;;  %v1595_v38 = vadd.f32 %v1594_v33, %v1553_v2 }
 0x170   :  { %v1507_v10 = vmul.f32 %v1506_v30, %v1491_v34  ;;  %v1516_v45 = vxor.u32 2147483648, %v1499_v43 }
 0x171   :  { %v846_v0 = vor.u32 4788187, %v845_v56  ;;  %v849_v25 = vcvt.s32.f32 %v842_v32  ;;  %v1605_v26 = vadd.f32 %v2939_v5, %v1595_v38  ;;  %v118_v56 = vld [vmem:[%s3020_s1 + $0x60] sm:$0xff] }
 0x172   :  { %v1513_v27 = vxor.u32 2147483648, %v1507_v10  ;;  %v1517_v40 = vsel %vm1515_vm6, %v1516_v45, %v1507_v10  ;;  %1680 = vmatpush.msra.mxu3 %v118_v56 }
 0x173   :  { %v847_v15 = vand.u32 2147483647, %v846_v0  ;;  %v1609_v9 = vmax.f32 %v1605_v26, 0.0  ;;  %v111_v0 = vld [vmem:[%s3020_s1 + $0x28] sm:$0xff] }
 0x174   :  { %v1514_v57 = vsel %vm1512_vm7, %v1499_v43, %v1513_v27  ;;  %v116_v27 = vld [vmem:[%s3020_s1 + $0x50] sm:$0xff] }
 0x175   :  { %v1518_v18 = vsel %vm1511_vm8, %v1514_v57, %v1517_v40  ;;  %v850_v29 = vmul.f32 %v849_v25, %v847_v15  ;;  %v115_v40 = vld [vmem:[%s3020_s1 + $0x48] sm:$0xff] }
 0x176   :  { %v1519_v37 = vsel %vm1508_vm9, nan, %v1518_v18  ;;  %1768 = vmatmul.msk.f32.gmra.mxu2 %vm1613_vm12, %v1609_v9 }
 0x177   :  { %1762 = vmatmul.msk.f32.gmra.mxu0 %vm1520_vm5, %v1519_v37  ;;  %v851_v48 = vxor.u32 2147483648, %v850_v29 }
 0x179   :  { %v852_v47 = vsel %vm731_vm10, %v851_v48, %v850_v29 }
 0x17a   :  { %v855_v59 = vsel %vm2949_vm11, %v2684_v22, %v852_v47  ;;  %v117_v22 = vld [vmem:[%s3020_s1 + $0x58] sm:$0xff] }
 0x17b   :  { %v857_v34 = vmul.f32 %v855_v59, %v855_v59  ;;  %1681 = vmatpush.msra.mxu3 %v117_v22 }
 0x17d   :  { %v858_v24 = vmul.f32 -0.001358992, %v857_v34  ;;  %v865_v63 = vmul.f32 -0.00019511016, %v857_v34  ;;  %1682 = vmatpush.msra.mxu3 %v116_v27 }
 0x17f   :  { %v859_v55 = vadd.f32 0.041655596, %v858_v24  ;;  %v866_v35 = vadd.f32 0.008332121, %v865_v63  ;;  %1683 = vmatpush.msra.mxu3 %v115_v40 }
 0x181   :  { %v860_v16 = vmul.f32 %v859_v55, %v857_v34  ;;  %v867_v39 = vmul.f32 %v866_v35, %v857_v34  ;;  %1684 = vmatpush.msra.mxu3 %v114_v12 }
 0x183   :  { %v861_v19 = vadd.f32 -0.4999988, %v860_v16  ;;  %v868_v11 = vadd.f32 -0.16666654, %v867_v39  ;;  %1685 = vmatpush.msra.mxu3 %v113_v42 }
 0x185   :  { %v862_v46 = vmul.f32 %v861_v19, %v857_v34  ;;  %v869_v31 = vmul.f32 %v868_v11, %v857_v34  ;;  %1686 = vmatpush.msra.mxu3 %v112_v61 }
 0x187   :  { %v863_v49 = vadd.f32 1.0, %v862_v46  ;;  %v870_v36 = vadd.f32 1.0, %v869_v31  ;;  %1687 = vmatpush.msra.mxu3 %v111_v0 }
 0x189   :  { %v871_v50 = vmul.f32 %v870_v36, %v855_v59  ;;  %v880_v14 = vxor.u32 2147483648, %v863_v49 }
 0x18b   :  { %v877_v51 = vxor.u32 2147483648, %v871_v50  ;;  %v881_v41 = vsel %vm879_vm13, %v880_v14, %v871_v50 }
 0x18d   :  { %v878_v53 = vsel %vm876_vm14, %v863_v49, %v877_v51 }
 0x18e   :  { %v882_v43 = vsel %vm875_vm15, %v878_v53, %v881_v41 }
 0x18f   :  { %v883_v30 = vsel %vm872_vm0, nan, %v882_v43 }
 0x190   :  { %1766 = vmatmul.msk.f32.gmra.mxu1 %vm1520_vm5, %v883_v30 }
 0x1a8   :  { %v1556_v21 = vpop.f32.mrf.mxu0 }
 0x1bd   :  { %v1597_v1 = vpop.f32.mrf.mxu1 }
 0x1be   :  { %v1598_v10 = vadd.f32 %v1597_v1, %v1556_v21 }
 0x1c0   :  { %v1606_v45 = vadd.f32 %v2939_v5, %v1598_v10 }
 0x1c2   :  { %v1610_v32 = vmax.f32 %v1606_v45, 0.0 }
 0x1c4   :  { %1769 = vmatmul.msk.f32.gmra.mxu2 %vm1613_vm12, %v1610_v32 }
 0x1f1   :  { %v1643_v25 = vpop.f32.mrf.mxu2 }
 0x1f2   :  { %v1644_v57 = vadd.f32 %v1789_v4, %v1643_v25 }
 0x1f4   :  { %v1655_v3 = vmax.f32 %v1644_v57, 0.0  ;;  %v1559_v18 = vpop.f32.mrf.mxu0 }
 0x1f6   :  { %1771 = vmatmul.msk.f32.vlgmr.msra.gmra.mxu3 %vm1613_vm12, %v1655_v3 }
 0x1f9   :  { %v1646_v15 = vpop.f32.mrf.mxu2 }
 0x1fa   :  { %v1647_v37 = vadd.f32 %v1789_v4, %v1646_v15 }
 0x1fc   :  { %v1656_v29 = vmax.f32 %v1647_v37, 0.0 }
 0x1fe   :  { %1772 = vmatmul.msk.f32.gmra.mxu3 %vm1613_vm12, %v1656_v29 }
 0x20d   :  { %v1600_v23 = vpop.f32.mrf.mxu1 }
 0x20e   :  { %v1601_v28 = vadd.f32 %v1600_v23, %v1559_v18 }
 0x210   :  { %v1607_v20 = vadd.f32 %v2939_v5, %v1601_v28 }
 0x212   :  { %v1611_v6 = vmax.f32 %v1607_v20, 0.0 }
 0x214   :  { %1770 = vmatmul.msk.f32.gmra.mxu2 %vm1613_vm12, %v1611_v6 }
 0x247   :  { %v1649_v62 = vpop.f32.mrf.mxu2 }
 0x248   :  { %v1650_v48 = vadd.f32 %v1789_v4, %v1649_v62 }
 0x24a   :  { %v1657_v13 = vmax.f32 %v1650_v48, 0.0 }
 0x24c   :  { %1773 = vmatmul.msk.f32.gmra.mxu3 %vm1613_vm12, %v1657_v13 }
 0x279   :  { %v1689_v47 = vpop.f32.mrf.mxu3 }
 0x27a   :  { %v1690_v2 = vadd.f32 %v1790_v7, %v1689_v47 }
 0x27c   :  { %1701 = vst.msk [vmem:[#allocation5] sm:$0xff] %vm1520_vm5, %v1690_v2 }
 0x281   :  { %v1692_v33 = vpop.f32.mrf.mxu3 }
 0x282   :  { %v1693_v5 = vadd.f32 %v1790_v7, %v1692_v33 }
 0x284   :  { %1702 = vst.msk [vmem:[#allocation5 + $0x8] sm:$0xff] %vm1520_vm5, %v1693_v5 }
 0x297   :  { %v1652_v44 = vpop.f32.mrf.mxu2 }
 0x298   :  { %v1653_v59 = vadd.f32 %v1789_v4, %v1652_v44 }
 0x29a   :  { %v1658_v8 = vmax.f32 %v1653_v59, 0.0 }
 0x29c   :  { %1774 = vmatmul.msk.f32.gmra.mxu3 %vm1613_vm12, %v1658_v8 }
 0x2cf   :  { %v1695_v34 = vpop.f32.mrf.mxu3 }
 0x2d0   :  { %v1696_v17 = vadd.f32 %v1790_v7, %v1695_v34 }
 0x2d2   :  { %1703 = vst.msk [vmem:[#allocation5 + $0x10] sm:$0xff] %vm1520_vm5, %v1696_v17 }
 0x31f   :  { %v1698_v54 = vpop.f32.mrf.mxu3 }
 0x320   :  { %v1699_v38 = vadd.f32 %v1790_v7, %v1698_v54 }
 0x322   :  { %1704 = vst.msk [vmem:[#allocation5 + $0x18] sm:$0xff] %vm1520_vm5, %v1699_v38 }
 0x323   :  { %1717 = dma.vmem_to_hbm [thread:$0]  %s1710_s10, 512, %s1712_s12, [#allocation3], %s1862_s13, %s1862_s13, %s1863_s14  }
 0x324   :  { %1851 = dma.done.wait [#allocation3], 512  }
 0x325   :  { %1852 = vsyncadd [#allocation3], 4294966784 }
 0x326   :  { %1722 = vsyncpa [#allocation3], 1 }
 0x327   :  { %1723 = vsyncpa [#allocation4], 1 }

</bundles_post_ra>
